<compile_context>
chip_gen: v6e
topology: v6e:2x2x1
jax: 0.10.0
libtpu: 0.0.40
codegen_flags: <defaults>
</compile_context>

<pallas_src>
import jax
import jax.numpy as jnp
from jax import lax
from jax.experimental import pallas as pl
from jax.experimental.pallas import tpu as pltpu


def _round_up(x, m):
    return (x + m - 1) // m * m


def lstm_fc_kernel(x_ref, wx_ref, wh_ref, b_ref, wfc_ref, bfc_ref, out_ref, xp_ref):
    """Full LSTM recurrence + final FC in one kernel invocation.

    x_ref  : (T, Bp, D)     time-major, batch padded to a sublane multiple
    wx_ref : (D, 4*Hp)      packed input->gate weights  (gate order i,f,g,o)
    wh_ref : (Hp, 4*Hp)     packed hidden->gate weights (zero-padded rows/cols)
    b_ref  : (1, 4*Hp)      combined bias (b_ih + b_hh), zero in padded cols
    wfc_ref: (Hp, Op)       fc weight, transposed, zero-padded rows & cols
    bfc_ref: (1, Op)        fc bias, zero-padded cols
    out_ref: (Bp, Op)       lane-dense padded output (sliced in the wrapper)
    xp_ref : (T, Bp, 4*Hp)  VMEM scratch: hoisted input projection
    """
    T, Bp, D = x_ref.shape
    Hp4 = wh_ref.shape[-1]
    Hp = Hp4 // 4

    # ---- (1) Hoisted input projection + bias (off the serial chain). --------
    if D >= 32:
        # Large contraction: worth the MXU.
        x2 = x_ref[...].reshape(T * Bp, D)
        xp = jnp.dot(x2, wx_ref[...], preferred_element_type=jnp.float32)
        xp_ref[...] = xp.reshape(T, Bp, Hp4) + b_ref[...].reshape(1, 1, Hp4)
    else:
        # Tiny contraction (D_in = 1 here): pure VPU broadcast multiply-add;
        # frees the MXU/vex slots entirely for the recurrence.
        xv = x_ref[...]                      # (T, Bp, D)
        wx = wx_ref[...]                     # (D, 4*Hp)
        acc = b_ref[...].reshape(1, 1, Hp4)  # broadcasts up on first add
        for d in range(D):                   # D is static and small
            acc = acc + xv[:, :, d:d + 1] * wx[d:d + 1, :].reshape(1, 1, Hp4)
        xp_ref[...] = acc

    # ---- (2) Serial recurrence. ---------------------------------------------
    h0 = jnp.zeros((Bp, Hp), jnp.float32)
    c0 = jnp.zeros((Bp, Hp), jnp.float32)

    def step(t, carry):
        h, c = carry
        # Single packed hidden matmul per step; xp_ref[t] is a whole-tile,
        # sublane-aligned read of the precomputed input projection.
        z = xp_ref[t] + jnp.dot(h, wh_ref[...], preferred_element_type=jnp.float32)
        # Lane-aligned gate slices (Hp is a multiple of 128); gate order i,f,g,o.
        i = jax.nn.sigmoid(z[:, 0 * Hp:1 * Hp])
        f = jax.nn.sigmoid(z[:, 1 * Hp:2 * Hp])
        g = jnp.tanh(z[:, 2 * Hp:3 * Hp])
        o = jax.nn.sigmoid(z[:, 3 * Hp:4 * Hp])
        c_new = f * c + i * g
        h_new = o * jnp.tanh(c_new)
        return (h_new, c_new)

    # Full unroll only while T is small enough to stay inside the vreg file;
    # bounded unroll keeps scheduler overlap without the spill cliff.
    unroll = T if T <= 16 else 4
    h_fin, _ = lax.fori_loop(0, T, step, (h0, c0), unroll=unroll)

    # ---- (3) Final Linear on the last hidden state (fused, lane-dense). -----
    out = jnp.dot(h_fin, wfc_ref[...], preferred_element_type=jnp.float32) + bfc_ref[...]
    out_ref[...] = out.astype(out_ref.dtype)


def lstm_model_forward(x, packed_params, output_size):
    """x: (B, T, D_in) batch-first (PyTorch convention). Returns (B, output_size)."""
    wx, wh, b, wfc, bfc = packed_params
    B, T, D = x.shape
    Hp4 = wh.shape[-1]
    Hp = Hp4 // 4
    Op = wfc.shape[-1]
    Bp = _round_up(B, 8)          # sublane-granularity batch padding

    # Time-major + zero-pad batch rows: each timestep is a whole-tile row group.
    x_tm = jnp.transpose(x, (1, 0, 2))                      # (T, B, D)
    if Bp != B:
        x_tm = jnp.pad(x_tm, ((0, 0), (0, Bp - B), (0, 0)))  # (T, Bp, D)

    flops = 2 * T * Bp * (D + Hp) * Hp4 + 2 * Bp * Hp * Op
    transcendentals = 5 * T * Bp * Hp
    bytes_accessed = 4 * (
        T * Bp * D + wx.size + wh.size + b.size + wfc.size + bfc.size + Bp * Op
    )

    # Derive the VMEM limit from the actual buffers (inputs + output + xp
    # scratch) with 2x headroom, instead of a hard-coded constant.
    buf_bytes = 4 * (
        T * Bp * D + wx.size + wh.size + b.size + wfc.size + bfc.size
        + Bp * Op + T * Bp * Hp4
    )
    vmem_limit = int(min(max(2 * buf_bytes, 4 * 1024 * 1024), 128 * 1024 * 1024))

    out_p = pl.pallas_call(
        lstm_fc_kernel,
        out_shape=jax.ShapeDtypeStruct((Bp, Op), jnp.float32),
        in_specs=[pl.BlockSpec(memory_space=pltpu.MemorySpace.VMEM)] * 6,
        out_specs=pl.BlockSpec(memory_space=pltpu.MemorySpace.VMEM),
        scratch_shapes=[pltpu.VMEM((T, Bp, Hp4), jnp.float32)],
        cost_estimate=pl.CostEstimate(
            flops=int(flops),
            transcendentals=int(transcendentals),
            bytes_accessed=int(bytes_accessed),
        ),
        compiler_params=pltpu.CompilerParams(vmem_limit_bytes=vmem_limit),
    )(x_tm, wx, wh, b, wfc, bfc)

    return out_p[:B, :output_size]


def init_torch_params(key, input_size=1, hidden_size=50, output_size=1):
    """Deterministic init mirroring nn.LSTM / nn.Linear parameter shapes."""
    H, D, O = hidden_size, input_size, output_size
    k = 1.0 / jnp.sqrt(jnp.float32(H))
    keys = jax.random.split(key, 6)
    w_ih = jax.random.uniform(keys[0], (4 * H, D), jnp.float32, -k, k)
    w_hh = jax.random.uniform(keys[1], (4 * H, H), jnp.float32, -k, k)
    b_ih = jax.random.uniform(keys[2], (4 * H,), jnp.float32, -k, k)
    b_hh = jax.random.uniform(keys[3], (4 * H,), jnp.float32, -k, k)
    fc_w = jax.random.uniform(keys[4], (O, H), jnp.float32, -k, k)
    fc_b = jax.random.uniform(keys[5], (O,), jnp.float32, -k, k)
    return (w_ih, w_hh, b_ih, b_hh, fc_w, fc_b)


def pack_params(torch_params, hidden_size):
    """Repack PyTorch-shaped LSTM/Linear params for the kernel.

    Gates are concatenated along a lane-padded axis of width Hp = round_up(H,128)
    each, pre-transposed so every matmul is plain `act @ W`.  The fc weight is
    lane-padded to Op = round_up(O, 128) so the output store is lane-dense.
    Zero padding keeps padded h/c columns identically zero, so no masking is
    required.  (On v6e/v7x, casting these to bfloat16 halves per-step weight
    streaming; keep f32 accumulation and loosen the reference tolerance.)
    """
    w_ih, w_hh, b_ih, b_hh, fc_w, fc_b = torch_params
    H = hidden_size
    D = w_ih.shape[1]
    O = fc_w.shape[0]
    Hp = _round_up(H, 128)
    Op = _round_up(O, 128)

    wx = jnp.zeros((D, 4 * Hp), jnp.float32)
    wh = jnp.zeros((Hp, 4 * Hp), jnp.float32)
    b = jnp.zeros((1, 4 * Hp), jnp.float32)
    for g in range(4):  # gate order i, f, g, o (matches nn.LSTM)
        wx = wx.at[:, g * Hp:g * Hp + H].set(w_ih[g * H:(g + 1) * H, :].T)
        wh = wh.at[:H, g * Hp:g * Hp + H].set(w_hh[g * H:(g + 1) * H, :].T)
        b = b.at[0, g * Hp:g * Hp + H].set(b_ih[g * H:(g + 1) * H] + b_hh[g * H:(g + 1) * H])
    wfc = jnp.zeros((Hp, Op), jnp.float32).at[:H, :O].set(fc_w.T)
    bfc = jnp.zeros((1, Op), jnp.float32).at[0, :O].set(fc_b)
    return (wx, wh, b, wfc, bfc)


def reference_forward(x, torch_params):
    """Pure-JAX reference of the same math (unpadded), for correctness check."""
    w_ih, w_hh, b_ih, b_hh, fc_w, fc_b = torch_params
    B = x.shape[0]
    H = w_hh.shape[1]

    def step(carry, x_t):
        h, c = carry
        z = x_t @ w_ih.T + h @ w_hh.T + b_ih + b_hh
        i = jax.nn.sigmoid(z[:, 0 * H:1 * H])
        f = jax.nn.sigmoid(z[:, 1 * H:2 * H])
        g = jnp.tanh(z[:, 2 * H:3 * H])
        o = jax.nn.sigmoid(z[:, 3 * H:4 * H])
        c_new = f * c + i * g
        h_new = o * jnp.tanh(c_new)
        return (h_new, c_new), None

    h0 = jnp.zeros((B, H), jnp.float32)
    c0 = jnp.zeros((B, H), jnp.float32)
    (h_fin, _), _ = lax.scan(step, (h0, c0), jnp.transpose(x, (1, 0, 2)))
    return h_fin @ fc_w.T + fc_b


if __name__ == "__main__":
    B, T, D_in = 2, 8, 1
    hidden_size, output_size = 50, 1

    key = jax.random.PRNGKey(0)
    k_x, k_p = jax.random.split(key)
    x = jax.random.normal(k_x, (B, T, D_in), jnp.float32)

    torch_params = init_torch_params(k_p, D_in, hidden_size, output_size)
    packed_params = pack_params(torch_params, hidden_size)

    out = lstm_model_forward(x, packed_params, output_size)
    out = jax.block_until_ready(out)

    ref = reference_forward(x, torch_params)
    assert out.shape == (B, output_size)
    assert jnp.allclose(out, ref, atol=1e-5, rtol=1e-5)

    print("KERNEL_OK")
</pallas_src>

<mosaic_0001>
module attributes {stable_mosaic.version = 11 : i64} {
  func.func @lstm_fc_kernel(%arg0: memref<8x8x1xf32, #tpu.memory_space<vmem>>, %arg1: memref<1x512xf32, #tpu.memory_space<vmem>>, %arg2: memref<128x512xf32, #tpu.memory_space<vmem>>, %arg3: memref<1x512xf32, #tpu.memory_space<vmem>>, %arg4: memref<128x128xf32, #tpu.memory_space<vmem>>, %arg5: memref<1x128xf32, #tpu.memory_space<vmem>>, %arg6: memref<8x128xf32, #tpu.memory_space<vmem>>, %arg7: memref<8x8x512xf32, #tpu.memory_space<vmem>>) attributes {dimension_semantics = [], scalar_prefetch = 0 : i64, scratch_operands = 1 : i64, tpu.core_type = #tpu.core_type<tc>} {
    %c0 = arith.constant 0 : index
    %c0_0 = arith.constant 0 : index
    %c0_1 = arith.constant 0 : index
    %0 = vector.load %arg0[%c0, %c0_0, %c0_1] : memref<8x8x1xf32, #tpu.memory_space<vmem>>, vector<8x8x1xf32>
    %c0_2 = arith.constant 0 : index
    %c0_3 = arith.constant 0 : index
    %1 = vector.load %arg1[%c0_2, %c0_3] : memref<1x512xf32, #tpu.memory_space<vmem>>, vector<1x512xf32>
    %c0_4 = arith.constant 0 : index
    %c0_5 = arith.constant 0 : index
    %2 = vector.load %arg3[%c0_4, %c0_5] : memref<1x512xf32, #tpu.memory_space<vmem>>, vector<1x512xf32>
    %3 = vector.shape_cast %2 : vector<1x512xf32> to vector<1x1x512xf32>
    %4 = vector.shape_cast %1 : vector<1x512xf32> to vector<1x1x512xf32>
    %5 = vector.broadcast %0 : vector<8x8x1xf32> to vector<8x8x512xf32>
    %6 = vector.broadcast %4 : vector<1x1x512xf32> to vector<8x8x512xf32>
    %7 = arith.mulf %5, %6 : vector<8x8x512xf32>
    %8 = vector.broadcast %3 : vector<1x1x512xf32> to vector<8x8x512xf32>
    %9 = arith.addf %8, %7 : vector<8x8x512xf32>
    %c0_6 = arith.constant 0 : index
    %c0_7 = arith.constant 0 : index
    %c0_8 = arith.constant 0 : index
    %10 = vector.load %arg7[%c0_6, %c0_7, %c0_8] : memref<8x8x512xf32, #tpu.memory_space<vmem>>, vector<8x8x512xf32>
    tpu.vector_store %arg7[%c0_6, %c0_7, %c0_8], %9 {strides = array<i32>} : memref<8x8x512xf32, #tpu.memory_space<vmem>>, vector<8x8x512xf32>,
    %cst = arith.constant 0.000000e+00 : f32
    %11 = vector.broadcast %cst : f32 to vector<8x128xf32>
    %cst_9 = arith.constant 0.000000e+00 : f32
    %12 = vector.broadcast %cst_9 : f32 to vector<8x128xf32>
    %c0_i32 = arith.constant 0 : i32
    %13 = arith.index_cast %c0_i32 : i32 to index
    %c0_10 = arith.constant 0 : index
    %c0_11 = arith.constant 0 : index
    %14 = vector.load %arg7[%13, %c0_10, %c0_11] : memref<8x8x512xf32, #tpu.memory_space<vmem>>, vector<1x8x512xf32>
    %15 = vector.shape_cast %14 : vector<1x8x512xf32> to vector<8x512xf32>
    %c0_12 = arith.constant 0 : index
    %c0_13 = arith.constant 0 : index
    %16 = vector.load %arg2[%c0_12, %c0_13] : memref<128x512xf32, #tpu.memory_space<vmem>>, vector<128x512xf32>
    %cst_14 = arith.constant dense<0.000000e+00> : vector<8x512xf32>
    %17 = tpu.matmul %11, %16, %cst_14 {dimension_numbers = #tpu.dot_dimension_numbers<[1], [0], [0], [1], [0, 0, 1, 1], [], []>} : vector<8x128xf32>, vector<128x512xf32>, vector<8x512xf32> -> vector<8x512xf32>
    %18 = arith.addf %15, %17 : vector<8x512xf32>
    %19 = vector.extract_strided_slice %18 {offsets = [0, 0], sizes = [8, 128], strides = [1, 1]} : vector<8x512xf32> to vector<8x128xf32>
    %20 = arith.negf %19 : vector<8x128xf32>
    %21 = math.exp %20 : vector<8x128xf32>
    %cst_15 = arith.constant 1.000000e+00 : f32
    %22 = vector.broadcast %cst_15 : f32 to vector<8x128xf32>
    %23 = arith.addf %22, %21 : vector<8x128xf32>
    %24 = arith.divf %22, %23 : vector<8x128xf32>
    %25 = vector.extract_strided_slice %18 {offsets = [0, 128], sizes = [8, 128], strides = [1, 1]} : vector<8x512xf32> to vector<8x128xf32>
    %26 = arith.negf %25 : vector<8x128xf32>
    %27 = math.exp %26 : vector<8x128xf32>
    %cst_16 = arith.constant 1.000000e+00 : f32
    %28 = vector.broadcast %cst_16 : f32 to vector<8x128xf32>
    %29 = arith.addf %28, %27 : vector<8x128xf32>
    %30 = arith.divf %28, %29 : vector<8x128xf32>
    %31 = vector.extract_strided_slice %18 {offsets = [0, 256], sizes = [8, 128], strides = [1, 1]} : vector<8x512xf32> to vector<8x128xf32>
    %32 = math.tanh %31 : vector<8x128xf32>
    %33 = vector.extract_strided_slice %18 {offsets = [0, 384], sizes = [8, 128], strides = [1, 1]} : vector<8x512xf32> to vector<8x128xf32>
    %34 = arith.negf %33 : vector<8x128xf32>
    %35 = math.exp %34 : vector<8x128xf32>
    %cst_17 = arith.constant 1.000000e+00 : f32
    %36 = vector.broadcast %cst_17 : f32 to vector<8x128xf32>
    %37 = arith.addf %36, %35 : vector<8x128xf32>
    %38 = arith.divf %36, %37 : vector<8x128xf32>
    %39 = arith.mulf %30, %12 : vector<8x128xf32>
    %40 = arith.mulf %24, %32 : vector<8x128xf32>
    %41 = arith.addf %39, %40 : vector<8x128xf32>
    %42 = math.tanh %41 : vector<8x128xf32>
    %43 = arith.mulf %38, %42 : vector<8x128xf32>
    %c1_i32 = arith.constant 1 : i32
    %44 = arith.index_cast %c1_i32 : i32 to index
    %c0_18 = arith.constant 0 : index
    %c0_19 = arith.constant 0 : index
    %45 = vector.load %arg7[%44, %c0_18, %c0_19] : memref<8x8x512xf32, #tpu.memory_space<vmem>>, vector<1x8x512xf32>
    %46 = vector.shape_cast %45 : vector<1x8x512xf32> to vector<8x512xf32>
    %c0_20 = arith.constant 0 : index
    %c0_21 = arith.constant 0 : index
    %47 = vector.load %arg2[%c0_20, %c0_21] : memref<128x512xf32, #tpu.memory_space<vmem>>, vector<128x512xf32>
    %cst_22 = arith.constant dense<0.000000e+00> : vector<8x512xf32>
    %48 = tpu.matmul %43, %47, %cst_22 {dimension_numbers = #tpu.dot_dimension_numbers<[1], [0], [0], [1], [0, 0, 1, 1], [], []>} : vector<8x128xf32>, vector<128x512xf32>, vector<8x512xf32> -> vector<8x512xf32>
    %49 = arith.addf %46, %48 : vector<8x512xf32>
    %50 = vector.extract_strided_slice %49 {offsets = [0, 0], sizes = [8, 128], strides = [1, 1]} : vector<8x512xf32> to vector<8x128xf32>
    %51 = arith.negf %50 : vector<8x128xf32>
    %52 = math.exp %51 : vector<8x128xf32>
    %cst_23 = arith.constant 1.000000e+00 : f32
    %53 = vector.broadcast %cst_23 : f32 to vector<8x128xf32>
    %54 = arith.addf %53, %52 : vector<8x128xf32>
    %55 = arith.divf %53, %54 : vector<8x128xf32>
    %56 = vector.extract_strided_slice %49 {offsets = [0, 128], sizes = [8, 128], strides = [1, 1]} : vector<8x512xf32> to vector<8x128xf32>
    %57 = arith.negf %56 : vector<8x128xf32>
    %58 = math.exp %57 : vector<8x128xf32>
    %cst_24 = arith.constant 1.000000e+00 : f32
    %59 = vector.broadcast %cst_24 : f32 to vector<8x128xf32>
    %60 = arith.addf %59, %58 : vector<8x128xf32>
    %61 = arith.divf %59, %60 : vector<8x128xf32>
    %62 = vector.extract_strided_slice %49 {offsets = [0, 256], sizes = [8, 128], strides = [1, 1]} : vector<8x512xf32> to vector<8x128xf32>
    %63 = math.tanh %62 : vector<8x128xf32>
    %64 = vector.extract_strided_slice %49 {offsets = [0, 384], sizes = [8, 128], strides = [1, 1]} : vector<8x512xf32> to vector<8x128xf32>
    %65 = arith.negf %64 : vector<8x128xf32>
    %66 = math.exp %65 : vector<8x128xf32>
    %cst_25 = arith.constant 1.000000e+00 : f32
    %67 = vector.broadcast %cst_25 : f32 to vector<8x128xf32>
    %68 = arith.addf %67, %66 : vector<8x128xf32>
    %69 = arith.divf %67, %68 : vector<8x128xf32>
    %70 = arith.mulf %61, %41 : vector<8x128xf32>
    %71 = arith.mulf %55, %63 : vector<8x128xf32>
    %72 = arith.addf %70, %71 : vector<8x128xf32>
    %73 = math.tanh %72 : vector<8x128xf32>
    %74 = arith.mulf %69, %73 : vector<8x128xf32>
    %c2_i32 = arith.constant 2 : i32
    %75 = arith.index_cast %c2_i32 : i32 to index
    %c0_26 = arith.constant 0 : index
    %c0_27 = arith.constant 0 : index
    %76 = vector.load %arg7[%75, %c0_26, %c0_27] : memref<8x8x512xf32, #tpu.memory_space<vmem>>, vector<1x8x512xf32>
    %77 = vector.shape_cast %76 : vector<1x8x512xf32> to vector<8x512xf32>
    %c0_28 = arith.constant 0 : index
    %c0_29 = arith.constant 0 : index
    %78 = vector.load %arg2[%c0_28, %c0_29] : memref<128x512xf32, #tpu.memory_space<vmem>>, vector<128x512xf32>
    %cst_30 = arith.constant dense<0.000000e+00> : vector<8x512xf32>
    %79 = tpu.matmul %74, %78, %cst_30 {dimension_numbers = #tpu.dot_dimension_numbers<[1], [0], [0], [1], [0, 0, 1, 1], [], []>} : vector<8x128xf32>, vector<128x512xf32>, vector<8x512xf32> -> vector<8x512xf32>
    %80 = arith.addf %77, %79 : vector<8x512xf32>
    %81 = vector.extract_strided_slice %80 {offsets = [0, 0], sizes = [8, 128], strides = [1, 1]} : vector<8x512xf32> to vector<8x128xf32>
    %82 = arith.negf %81 : vector<8x128xf32>
    %83 = math.exp %82 : vector<8x128xf32>
    %cst_31 = arith.constant 1.000000e+00 : f32
    %84 = vector.broadcast %cst_31 : f32 to vector<8x128xf32>
    %85 = arith.addf %84, %83 : vector<8x128xf32>
    %86 = arith.divf %84, %85 : vector<8x128xf32>
    %87 = vector.extract_strided_slice %80 {offsets = [0, 128], sizes = [8, 128], strides = [1, 1]} : vector<8x512xf32> to vector<8x128xf32>
    %88 = arith.negf %87 : vector<8x128xf32>
    %89 = math.exp %88 : vector<8x128xf32>
    %cst_32 = arith.constant 1.000000e+00 : f32
    %90 = vector.broadcast %cst_32 : f32 to vector<8x128xf32>
    %91 = arith.addf %90, %89 : vector<8x128xf32>
    %92 = arith.divf %90, %91 : vector<8x128xf32>
    %93 = vector.extract_strided_slice %80 {offsets = [0, 256], sizes = [8, 128], strides = [1, 1]} : vector<8x512xf32> to vector<8x128xf32>
    %94 = math.tanh %93 : vector<8x128xf32>
    %95 = vector.extract_strided_slice %80 {offsets = [0, 384], sizes = [8, 128], strides = [1, 1]} : vector<8x512xf32> to vector<8x128xf32>
    %96 = arith.negf %95 : vector<8x128xf32>
    %97 = math.exp %96 : vector<8x128xf32>
    %cst_33 = arith.constant 1.000000e+00 : f32
    %98 = vector.broadcast %cst_33 : f32 to vector<8x128xf32>
    %99 = arith.addf %98, %97 : vector<8x128xf32>
    %100 = arith.divf %98, %99 : vector<8x128xf32>
    %101 = arith.mulf %92, %72 : vector<8x128xf32>
    %102 = arith.mulf %86, %94 : vector<8x128xf32>
    %103 = arith.addf %101, %102 : vector<8x128xf32>
    %104 = math.tanh %103 : vector<8x128xf32>
    %105 = arith.mulf %100, %104 : vector<8x128xf32>
    %c3_i32 = arith.constant 3 : i32
    %106 = arith.index_cast %c3_i32 : i32 to index
    %c0_34 = arith.constant 0 : index
    %c0_35 = arith.constant 0 : index
    %107 = vector.load %arg7[%106, %c0_34, %c0_35] : memref<8x8x512xf32, #tpu.memory_space<vmem>>, vector<1x8x512xf32>
    %108 = vector.shape_cast %107 : vector<1x8x512xf32> to vector<8x512xf32>
    %c0_36 = arith.constant 0 : index
    %c0_37 = arith.constant 0 : index
    %109 = vector.load %arg2[%c0_36, %c0_37] : memref<128x512xf32, #tpu.memory_space<vmem>>, vector<128x512xf32>
    %cst_38 = arith.constant dense<0.000000e+00> : vector<8x512xf32>
    %110 = tpu.matmul %105, %109, %cst_38 {dimension_numbers = #tpu.dot_dimension_numbers<[1], [0], [0], [1], [0, 0, 1, 1], [], []>} : vector<8x128xf32>, vector<128x512xf32>, vector<8x512xf32> -> vector<8x512xf32>
    %111 = arith.addf %108, %110 : vector<8x512xf32>
    %112 = vector.extract_strided_slice %111 {offsets = [0, 0], sizes = [8, 128], strides = [1, 1]} : vector<8x512xf32> to vector<8x128xf32>
    %113 = arith.negf %112 : vector<8x128xf32>
    %114 = math.exp %113 : vector<8x128xf32>
    %cst_39 = arith.constant 1.000000e+00 : f32
    %115 = vector.broadcast %cst_39 : f32 to vector<8x128xf32>
    %116 = arith.addf %115, %114 : vector<8x128xf32>
    %117 = arith.divf %115, %116 : vector<8x128xf32>
    %118 = vector.extract_strided_slice %111 {offsets = [0, 128], sizes = [8, 128], strides = [1, 1]} : vector<8x512xf32> to vector<8x128xf32>
    %119 = arith.negf %118 : vector<8x128xf32>
    %120 = math.exp %119 : vector<8x128xf32>
    %cst_40 = arith.constant 1.000000e+00 : f32
    %121 = vector.broadcast %cst_40 : f32 to vector<8x128xf32>
    %122 = arith.addf %121, %120 : vector<8x128xf32>
    %123 = arith.divf %121, %122 : vector<8x128xf32>
    %124 = vector.extract_strided_slice %111 {offsets = [0, 256], sizes = [8, 128], strides = [1, 1]} : vector<8x512xf32> to vector<8x128xf32>
    %125 = math.tanh %124 : vector<8x128xf32>
    %126 = vector.extract_strided_slice %111 {offsets = [0, 384], sizes = [8, 128], strides = [1, 1]} : vector<8x512xf32> to vector<8x128xf32>
    %127 = arith.negf %126 : vector<8x128xf32>
    %128 = math.exp %127 : vector<8x128xf32>
    %cst_41 = arith.constant 1.000000e+00 : f32
    %129 = vector.broadcast %cst_41 : f32 to vector<8x128xf32>
    %130 = arith.addf %129, %128 : vector<8x128xf32>
    %131 = arith.divf %129, %130 : vector<8x128xf32>
    %132 = arith.mulf %123, %103 : vector<8x128xf32>
    %133 = arith.mulf %117, %125 : vector<8x128xf32>
    %134 = arith.addf %132, %133 : vector<8x128xf32>
    %135 = math.tanh %134 : vector<8x128xf32>
    %136 = arith.mulf %131, %135 : vector<8x128xf32>
    %c4_i32 = arith.constant 4 : i32
    %137 = arith.index_cast %c4_i32 : i32 to index
    %c0_42 = arith.constant 0 : index
    %c0_43 = arith.constant 0 : index
    %138 = vector.load %arg7[%137, %c0_42, %c0_43] : memref<8x8x512xf32, #tpu.memory_space<vmem>>, vector<1x8x512xf32>
    %139 = vector.shape_cast %138 : vector<1x8x512xf32> to vector<8x512xf32>
    %c0_44 = arith.constant 0 : index
    %c0_45 = arith.constant 0 : index
    %140 = vector.load %arg2[%c0_44, %c0_45] : memref<128x512xf32, #tpu.memory_space<vmem>>, vector<128x512xf32>
    %cst_46 = arith.constant dense<0.000000e+00> : vector<8x512xf32>
    %141 = tpu.matmul %136, %140, %cst_46 {dimension_numbers = #tpu.dot_dimension_numbers<[1], [0], [0], [1], [0, 0, 1, 1], [], []>} : vector<8x128xf32>, vector<128x512xf32>, vector<8x512xf32> -> vector<8x512xf32>
    %142 = arith.addf %139, %141 : vector<8x512xf32>
    %143 = vector.extract_strided_slice %142 {offsets = [0, 0], sizes = [8, 128], strides = [1, 1]} : vector<8x512xf32> to vector<8x128xf32>
    %144 = arith.negf %143 : vector<8x128xf32>
    %145 = math.exp %144 : vector<8x128xf32>
    %cst_47 = arith.constant 1.000000e+00 : f32
    %146 = vector.broadcast %cst_47 : f32 to vector<8x128xf32>
    %147 = arith.addf %146, %145 : vector<8x128xf32>
    %148 = arith.divf %146, %147 : vector<8x128xf32>
    %149 = vector.extract_strided_slice %142 {offsets = [0, 128], sizes = [8, 128], strides = [1, 1]} : vector<8x512xf32> to vector<8x128xf32>
    %150 = arith.negf %149 : vector<8x128xf32>
    %151 = math.exp %150 : vector<8x128xf32>
    %cst_48 = arith.constant 1.000000e+00 : f32
    %152 = vector.broadcast %cst_48 : f32 to vector<8x128xf32>
    %153 = arith.addf %152, %151 : vector<8x128xf32>
    %154 = arith.divf %152, %153 : vector<8x128xf32>
    %155 = vector.extract_strided_slice %142 {offsets = [0, 256], sizes = [8, 128], strides = [1, 1]} : vector<8x512xf32> to vector<8x128xf32>
    %156 = math.tanh %155 : vector<8x128xf32>
    %157 = vector.extract_strided_slice %142 {offsets = [0, 384], sizes = [8, 128], strides = [1, 1]} : vector<8x512xf32> to vector<8x128xf32>
    %158 = arith.negf %157 : vector<8x128xf32>
    %159 = math.exp %158 : vector<8x128xf32>
    %cst_49 = arith.constant 1.000000e+00 : f32
    %160 = vector.broadcast %cst_49 : f32 to vector<8x128xf32>
    %161 = arith.addf %160, %159 : vector<8x128xf32>
    %162 = arith.divf %160, %161 : vector<8x128xf32>
    %163 = arith.mulf %154, %134 : vector<8x128xf32>
    %164 = arith.mulf %148, %156 : vector<8x128xf32>
    %165 = arith.addf %163, %164 : vector<8x128xf32>
    %166 = math.tanh %165 : vector<8x128xf32>
    %167 = arith.mulf %162, %166 : vector<8x128xf32>
    %c5_i32 = arith.constant 5 : i32
    %168 = arith.index_cast %c5_i32 : i32 to index
    %c0_50 = arith.constant 0 : index
    %c0_51 = arith.constant 0 : index
    %169 = vector.load %arg7[%168, %c0_50, %c0_51] : memref<8x8x512xf32, #tpu.memory_space<vmem>>, vector<1x8x512xf32>
    %170 = vector.shape_cast %169 : vector<1x8x512xf32> to vector<8x512xf32>
    %c0_52 = arith.constant 0 : index
    %c0_53 = arith.constant 0 : index
    %171 = vector.load %arg2[%c0_52, %c0_53] : memref<128x512xf32, #tpu.memory_space<vmem>>, vector<128x512xf32>
    %cst_54 = arith.constant dense<0.000000e+00> : vector<8x512xf32>
    %172 = tpu.matmul %167, %171, %cst_54 {dimension_numbers = #tpu.dot_dimension_numbers<[1], [0], [0], [1], [0, 0, 1, 1], [], []>} : vector<8x128xf32>, vector<128x512xf32>, vector<8x512xf32> -> vector<8x512xf32>
    %173 = arith.addf %170, %172 : vector<8x512xf32>
    %174 = vector.extract_strided_slice %173 {offsets = [0, 0], sizes = [8, 128], strides = [1, 1]} : vector<8x512xf32> to vector<8x128xf32>
    %175 = arith.negf %174 : vector<8x128xf32>
    %176 = math.exp %175 : vector<8x128xf32>
    %cst_55 = arith.constant 1.000000e+00 : f32
    %177 = vector.broadcast %cst_55 : f32 to vector<8x128xf32>
    %178 = arith.addf %177, %176 : vector<8x128xf32>
    %179 = arith.divf %177, %178 : vector<8x128xf32>
    %180 = vector.extract_strided_slice %173 {offsets = [0, 128], sizes = [8, 128], strides = [1, 1]} : vector<8x512xf32> to vector<8x128xf32>
    %181 = arith.negf %180 : vector<8x128xf32>
    %182 = math.exp %181 : vector<8x128xf32>
    %cst_56 = arith.constant 1.000000e+00 : f32
    %183 = vector.broadcast %cst_56 : f32 to vector<8x128xf32>
    %184 = arith.addf %183, %182 : vector<8x128xf32>
    %185 = arith.divf %183, %184 : vector<8x128xf32>
    %186 = vector.extract_strided_slice %173 {offsets = [0, 256], sizes = [8, 128], strides = [1, 1]} : vector<8x512xf32> to vector<8x128xf32>
    %187 = math.tanh %186 : vector<8x128xf32>
    %188 = vector.extract_strided_slice %173 {offsets = [0, 384], sizes = [8, 128], strides = [1, 1]} : vector<8x512xf32> to vector<8x128xf32>
    %189 = arith.negf %188 : vector<8x128xf32>
    %190 = math.exp %189 : vector<8x128xf32>
    %cst_57 = arith.constant 1.000000e+00 : f32
    %191 = vector.broadcast %cst_57 : f32 to vector<8x128xf32>
    %192 = arith.addf %191, %190 : vector<8x128xf32>
    %193 = arith.divf %191, %192 : vector<8x128xf32>
    %194 = arith.mulf %185, %165 : vector<8x128xf32>
    %195 = arith.mulf %179, %187 : vector<8x128xf32>
    %196 = arith.addf %194, %195 : vector<8x128xf32>
    %197 = math.tanh %196 : vector<8x128xf32>
    %198 = arith.mulf %193, %197 : vector<8x128xf32>
    %c6_i32 = arith.constant 6 : i32
    %199 = arith.index_cast %c6_i32 : i32 to index
    %c0_58 = arith.constant 0 : index
    %c0_59 = arith.constant 0 : index
    %200 = vector.load %arg7[%199, %c0_58, %c0_59] : memref<8x8x512xf32, #tpu.memory_space<vmem>>, vector<1x8x512xf32>
    %201 = vector.shape_cast %200 : vector<1x8x512xf32> to vector<8x512xf32>
    %c0_60 = arith.constant 0 : index
    %c0_61 = arith.constant 0 : index
    %202 = vector.load %arg2[%c0_60, %c0_61] : memref<128x512xf32, #tpu.memory_space<vmem>>, vector<128x512xf32>
    %cst_62 = arith.constant dense<0.000000e+00> : vector<8x512xf32>
    %203 = tpu.matmul %198, %202, %cst_62 {dimension_numbers = #tpu.dot_dimension_numbers<[1], [0], [0], [1], [0, 0, 1, 1], [], []>} : vector<8x128xf32>, vector<128x512xf32>, vector<8x512xf32> -> vector<8x512xf32>
    %204 = arith.addf %201, %203 : vector<8x512xf32>
    %205 = vector.extract_strided_slice %204 {offsets = [0, 0], sizes = [8, 128], strides = [1, 1]} : vector<8x512xf32> to vector<8x128xf32>
    %206 = arith.negf %205 : vector<8x128xf32>
    %207 = math.exp %206 : vector<8x128xf32>
    %cst_63 = arith.constant 1.000000e+00 : f32
    %208 = vector.broadcast %cst_63 : f32 to vector<8x128xf32>
    %209 = arith.addf %208, %207 : vector<8x128xf32>
    %210 = arith.divf %208, %209 : vector<8x128xf32>
    %211 = vector.extract_strided_slice %204 {offsets = [0, 128], sizes = [8, 128], strides = [1, 1]} : vector<8x512xf32> to vector<8x128xf32>
    %212 = arith.negf %211 : vector<8x128xf32>
    %213 = math.exp %212 : vector<8x128xf32>
    %cst_64 = arith.constant 1.000000e+00 : f32
    %214 = vector.broadcast %cst_64 : f32 to vector<8x128xf32>
    %215 = arith.addf %214, %213 : vector<8x128xf32>
    %216 = arith.divf %214, %215 : vector<8x128xf32>
    %217 = vector.extract_strided_slice %204 {offsets = [0, 256], sizes = [8, 128], strides = [1, 1]} : vector<8x512xf32> to vector<8x128xf32>
    %218 = math.tanh %217 : vector<8x128xf32>
    %219 = vector.extract_strided_slice %204 {offsets = [0, 384], sizes = [8, 128], strides = [1, 1]} : vector<8x512xf32> to vector<8x128xf32>
    %220 = arith.negf %219 : vector<8x128xf32>
    %221 = math.exp %220 : vector<8x128xf32>
    %cst_65 = arith.constant 1.000000e+00 : f32
    %222 = vector.broadcast %cst_65 : f32 to vector<8x128xf32>
    %223 = arith.addf %222, %221 : vector<8x128xf32>
    %224 = arith.divf %222, %223 : vector<8x128xf32>
    %225 = arith.mulf %216, %196 : vector<8x128xf32>
    %226 = arith.mulf %210, %218 : vector<8x128xf32>
    %227 = arith.addf %225, %226 : vector<8x128xf32>
    %228 = math.tanh %227 : vector<8x128xf32>
    %229 = arith.mulf %224, %228 : vector<8x128xf32>
    %c7_i32 = arith.constant 7 : i32
    %230 = arith.index_cast %c7_i32 : i32 to index
    %c0_66 = arith.constant 0 : index
    %c0_67 = arith.constant 0 : index
    %231 = vector.load %arg7[%230, %c0_66, %c0_67] : memref<8x8x512xf32, #tpu.memory_space<vmem>>, vector<1x8x512xf32>
    %232 = vector.shape_cast %231 : vector<1x8x512xf32> to vector<8x512xf32>
    %c0_68 = arith.constant 0 : index
    %c0_69 = arith.constant 0 : index
    %233 = vector.load %arg2[%c0_68, %c0_69] : memref<128x512xf32, #tpu.memory_space<vmem>>, vector<128x512xf32>
    %cst_70 = arith.constant dense<0.000000e+00> : vector<8x512xf32>
    %234 = tpu.matmul %229, %233, %cst_70 {dimension_numbers = #tpu.dot_dimension_numbers<[1], [0], [0], [1], [0, 0, 1, 1], [], []>} : vector<8x128xf32>, vector<128x512xf32>, vector<8x512xf32> -> vector<8x512xf32>
    %235 = arith.addf %232, %234 : vector<8x512xf32>
    %236 = vector.extract_strided_slice %235 {offsets = [0, 0], sizes = [8, 128], strides = [1, 1]} : vector<8x512xf32> to vector<8x128xf32>
    %237 = arith.negf %236 : vector<8x128xf32>
    %238 = math.exp %237 : vector<8x128xf32>
    %cst_71 = arith.constant 1.000000e+00 : f32
    %239 = vector.broadcast %cst_71 : f32 to vector<8x128xf32>
    %240 = arith.addf %239, %238 : vector<8x128xf32>
    %241 = arith.divf %239, %240 : vector<8x128xf32>
    %242 = vector.extract_strided_slice %235 {offsets = [0, 128], sizes = [8, 128], strides = [1, 1]} : vector<8x512xf32> to vector<8x128xf32>
    %243 = arith.negf %242 : vector<8x128xf32>
    %244 = math.exp %243 : vector<8x128xf32>
    %cst_72 = arith.constant 1.000000e+00 : f32
    %245 = vector.broadcast %cst_72 : f32 to vector<8x128xf32>
    %246 = arith.addf %245, %244 : vector<8x128xf32>
    %247 = arith.divf %245, %246 : vector<8x128xf32>
    %248 = vector.extract_strided_slice %235 {offsets = [0, 256], sizes = [8, 128], strides = [1, 1]} : vector<8x512xf32> to vector<8x128xf32>
    %249 = math.tanh %248 : vector<8x128xf32>
    %250 = vector.extract_strided_slice %235 {offsets = [0, 384], sizes = [8, 128], strides = [1, 1]} : vector<8x512xf32> to vector<8x128xf32>
    %251 = arith.negf %250 : vector<8x128xf32>
    %252 = math.exp %251 : vector<8x128xf32>
    %cst_73 = arith.constant 1.000000e+00 : f32
    %253 = vector.broadcast %cst_73 : f32 to vector<8x128xf32>
    %254 = arith.addf %253, %252 : vector<8x128xf32>
    %255 = arith.divf %253, %254 : vector<8x128xf32>
    %256 = arith.mulf %247, %227 : vector<8x128xf32>
    %257 = arith.mulf %241, %249 : vector<8x128xf32>
    %258 = arith.addf %256, %257 : vector<8x128xf32>
    %259 = math.tanh %258 : vector<8x128xf32>
    %260 = arith.mulf %255, %259 : vector<8x128xf32>
    %c8_i32 = arith.constant 8 : i32
    %c0_74 = arith.constant 0 : index
    %c0_75 = arith.constant 0 : index
    %261 = vector.load %arg4[%c0_74, %c0_75] : memref<128x128xf32, #tpu.memory_space<vmem>>, vector<128x128xf32>
    %cst_76 = arith.constant dense<0.000000e+00> : vector<8x128xf32>
    %262 = tpu.matmul %260, %261, %cst_76 {dimension_numbers = #tpu.dot_dimension_numbers<[1], [0], [0], [1], [0, 0, 1, 1], [], []>} : vector<8x128xf32>, vector<128x128xf32>, vector<8x128xf32> -> vector<8x128xf32>
    %c0_77 = arith.constant 0 : index
    %c0_78 = arith.constant 0 : index
    %263 = vector.load %arg5[%c0_77, %c0_78] : memref<1x128xf32, #tpu.memory_space<vmem>>, vector<1x128xf32>
    %264 = vector.broadcast %263 : vector<1x128xf32> to vector<8x128xf32>
    %265 = arith.addf %262, %264 : vector<8x128xf32>
    %c0_79 = arith.constant 0 : index
    %c0_80 = arith.constant 0 : index
    %266 = vector.load %arg6[%c0_79, %c0_80] : memref<8x128xf32, #tpu.memory_space<vmem>>, vector<8x128xf32>
    tpu.vector_store %arg6[%c0_79, %c0_80], %265 {strides = array<i32>} : memref<8x128xf32, #tpu.memory_space<vmem>>, vector<8x128xf32>,
    return
  }
}

</mosaic_0001>

<bundles_post_ra>
// kernel: tpu_custom_call.1
= control target key start
LH: loop header
LB: loop body
LE: loop exit
PB: predicated region body
PF: predicated region fallthrough
CT: control target
= control target key end

     0   :  { %11 = vsyncpa [#allocation4], 0  ;;  %s3158_s0 = inlined_call_operand.vmem [shape: f32[8,8,1], index: 0, kind: input, shape index: {}]   ;;  %s3159_s1 = inlined_call_operand.vmem [shape: f32[1,512], index: 1, kind: input, shape index: {}]   ;;  %s3160_s2 = inlined_call_operand.hbm [shape: f32[128,512], index: 2, kind: input, shape index: {}]   ;;  %s3161_s3 = inlined_call_operand.vmem [shape: f32[1,512], index: 3, kind: input, shape index: {}]   ;;  %s3162_s4 = inlined_call_operand.hbm [shape: f32[128,128], index: 4, kind: input, shape index: {}]   ;;  %s3163_s5 = inlined_call_operand.vmem [shape: f32[1,128], index: 5, kind: input, shape index: {}]   ;;  %s3164_s6 = inlined_call_operand.hbm [shape: f32[8,128], index: 6, kind: output, shape index: {}]  }
   0x1   :  { %12 = vsyncpa [#allocation7], 0 }
   0x2   :  { %13 = vsyncpa [#allocation5], 0  ;;  %s2160_s21 = smov [#allocation3]  }
   0x3   :  { %s23_s22 = sshll.u32 %s2160_s21, 4  ;;  %s24_s22 = int_to_ptr.vmem [resolvable:$true] %s23_s22 }
   0x4   :  { %s2102_s23 = scalar_lea.vmem %s24_s22, 8192  ;;  %p2107_p1 = scmp.lt.s32.totalorder %s24_s22, %s24_s22 }
   0x5   :  { %p2103_p0 = scmp.ne.s32.totalorder %s24_s22, %s2102_s23  ;;  %p2108_p2 = scmp.lt.s32.totalorder %s2102_s23, %s2102_s23 }
   0x7   :  { %p2109_p3 = por %p2108_p2, %p2107_p1 }
   0x9   :  { %p2110_p4 = pnand %p2109_p3, %p2103_p0 }
   0xb   :  { %2113 = shalt.err (!%p2110_p4)
}
   0xc   :  { %s2161_s24 = smov 512   ;;  %s2162_s25 = smov 32  }
   0xd   :  { %29 = dma.hbm_to_vmem [thread:$0]  %s3160_s2, 8192, %s24_s22, [#allocation4], %s2161_s24, %s2161_s24, %s2162_s25  }
   0xe   :  { %s2163_s28 = smov [#allocation6]  }
   0xf   :  { %s37_s29 = sshll.u32 %s2163_s28, 4  ;;  %s38_s29 = int_to_ptr.vmem [resolvable:$true] %s37_s29 }
  0x10   :  { %s2122_s30 = scalar_lea.vmem %s38_s29, 2048  ;;  %p2127_p6 = scmp.lt.s32.totalorder %s38_s29, %s38_s29 }
  0x11   :  { %p2123_p5 = scmp.ne.s32.totalorder %s38_s29, %s2122_s30  ;;  %p2128_p7 = scmp.lt.s32.totalorder %s2122_s30, %s2122_s30 }
  0x13   :  { %p2129_p8 = por %p2128_p7, %p2127_p6 }
  0x15   :  { %p2130_p9 = pnand %p2129_p8, %p2123_p5 }
  0x17   :  { %2133 = shalt.err (!%p2130_p9)
}
  0x18   :  { %s2164_s7 = smov 128   ;;  %s2165_s8 = smov 8  }
  0x19   :  { %43 = dma.hbm_to_vmem [thread:$0]  %s3162_s4, 2048, %s38_s29, [#allocation7], %s2164_s7, %s2164_s7, %s2165_s8  }
  0x1a   :  { %2154 = dma.done.wait [#allocation4], 8192  }
  0x1b   :  { %2155 = vsyncadd [#allocation4], 4294959104 }
  0x1c   :  { %2156 = dma.done.wait [#allocation7], 2048  }
  0x1d   :  { %2157 = vsyncadd [#allocation7], 4294965248  ;;  %v3165_v0 = vmov 0.0   ;;  %v2167_v1 = vmov 0   ;;  %v2213_v2 = vld [vmem:[#allocation3 + $0x1e8] sm:$0xff]  ;;  %v2215_v3 = vld [vmem:[#allocation3 + $0x1f8] sm:$0xff] }
  0x1e   :  { %372 = vmatprep.mubr.f32.mxu0 %v3165_v0  ;;  %443 = vmatprep.mubr.f32.mxu1 %v3165_v0  ;;  %3278 = vst [vmem:[#allocation12_spill] sm:$0xff] %v2213_v2  ;;  %3279 = vst [vmem:[#allocation13_spill] sm:$0xff] %v2215_v3  ;;  %v2217_v4 = vld [vmem:[#allocation3 + $0x1e0] sm:$0xff]  ;;  %v2221_v5 = vld [vmem:[#allocation3 + $0x1f0] sm:$0xff]  ;;  %vm2168_vm0 = vmmov 0   ;;  %s2169_s28 = smov [#allocation8]  }
  0x1f   :  { %1900 = vset.pattern.permute.xlu0 %v2167_v1  ;;  %1901 = vset.pattern.permute.xlu1 %v2167_v1  ;;  %v2223_v6 = vld [vmem:[#allocation3 + $0x1c8] sm:$0xff]  ;;  %v2225_v7 = vld [vmem:[#allocation3 + $0x1d8] sm:$0xff]  ;;  %v2229_v8 = vld [vmem:[#allocation3 + $0x1c0] sm:$0xff]  ;;  %s1803_s29 = sshll.u32 %s2169_s28, 4  ;;  %s1804_s29 = int_to_ptr.vmem [resolvable:$true] %s1803_s29 }
  0x20   :  { %308 = vmatprep.subr.mxu0 %v2213_v2  ;;  %379 = vmatprep.subr.mxu1 %v2215_v3  ;;  %v2231_v9 = vld [vmem:[#allocation3 + $0x1d0] sm:$0xff]  ;;  %v2233_v10 = vld [vmem:[#allocation3 + $0x1a8] sm:$0xff]  ;;  %v2237_v11 = vld [vmem:[#allocation3 + $0x1b8] sm:$0xff]  ;;  %s2134_s30 = scalar_lea.vmem %s1804_s29, 128  ;;  %p2139_p11 = scmp.lt.s32.totalorder %s1804_s29, %s1804_s29 }
  0x21   :  { %309 = vmatpush1.msra.mxu0 %v2217_v4  ;;  %380 = vmatpush1.msra.mxu1 %v2221_v5  ;;  %v2239_v12 = vld [vmem:[#allocation3 + $0x1a0] sm:$0xff]  ;;  %v2241_v13 = vld [vmem:[#allocation3 + $0x1b0] sm:$0xff]  ;;  %v2245_v14 = vld [vmem:[#allocation3 + $0x188] sm:$0xff]  ;;  %p2135_p10 = scmp.ne.s32.totalorder %s1804_s29, %s2134_s30  ;;  %p2140_p12 = scmp.lt.s32.totalorder %s2134_s30, %s2134_s30 }
  0x22   :  { %310 = vmatprep.subr.mxu0 %v2223_v6  ;;  %381 = vmatprep.subr.mxu1 %v2225_v7  ;;  %v2247_v15 = vld [vmem:[#allocation3 + $0x198] sm:$0xff]  ;;  %v2251_v16 = vld [vmem:[#allocation3 + $0x180] sm:$0xff]  ;;  %v2253_v17 = vld [vmem:[#allocation3 + $0x190] sm:$0xff] }
  0x23   :  { %311 = vmatpush1.msra.mxu0 %v2229_v8  ;;  %382 = vmatpush1.msra.mxu1 %v2231_v9  ;;  %v2257_v18 = vld [vmem:[#allocation3 + $0x168] sm:$0xff]  ;;  %v2259_v19 = vld [vmem:[#allocation3 + $0x178] sm:$0xff]  ;;  %v2263_v20 = vld [vmem:[#allocation3 + $0x160] sm:$0xff]  ;;  %p2141_p13 = por %p2140_p12, %p2139_p11 }
  0x24   :  { %312 = vmatprep.subr.mxu0 %v2233_v10  ;;  %383 = vmatprep.subr.mxu1 %v2237_v11  ;;  %v2265_v21 = vld [vmem:[#allocation3 + $0x170] sm:$0xff]  ;;  %v2269_v22 = vld [vmem:[#allocation3 + $0x148] sm:$0xff]  ;;  %v2271_v23 = vld [vmem:[#allocation3 + $0x158] sm:$0xff] }
  0x25   :  { %313 = vmatpush1.msra.mxu0 %v2239_v12  ;;  %384 = vmatpush1.msra.mxu1 %v2241_v13  ;;  %v2275_v24 = vld [vmem:[#allocation3 + $0x140] sm:$0xff]  ;;  %v2277_v25 = vld [vmem:[#allocation3 + $0x150] sm:$0xff]  ;;  %v2281_v26 = vld [vmem:[#allocation3 + $0x128] sm:$0xff]  ;;  %p2142_p0 = pnand %p2141_p13, %p2135_p10 }
  0x26   :  { %314 = vmatprep.subr.mxu0 %v2245_v14  ;;  %385 = vmatprep.subr.mxu1 %v2247_v15  ;;  %v2283_v27 = vld [vmem:[#allocation3 + $0x138] sm:$0xff]  ;;  %v2287_v28 = vld [vmem:[#allocation3 + $0x120] sm:$0xff]  ;;  %v2289_v29 = vld [vmem:[#allocation3 + $0x130] sm:$0xff] }
  0x27   :  { %315 = vmatpush1.msra.mxu0 %v2251_v16  ;;  %386 = vmatpush1.msra.mxu1 %v2253_v17  ;;  %v2293_v30 = vld [vmem:[#allocation3 + $0x108] sm:$0xff]  ;;  %v2295_v31 = vld [vmem:[#allocation3 + $0x118] sm:$0xff]  ;;  %v2299_v32 = vld [vmem:[#allocation3 + $0x100] sm:$0xff] }
  0x28   :  { %316 = vmatprep.subr.mxu0 %v2257_v18  ;;  %387 = vmatprep.subr.mxu1 %v2259_v19  ;;  %v2301_v33 = vld [vmem:[#allocation3 + $0x110] sm:$0xff]  ;;  %v2305_v34 = vld [vmem:[#allocation3 + $0xe8] sm:$0xff]  ;;  %v2307_v35 = vld [vmem:[#allocation3 + $0xf8] sm:$0xff] }
  0x29   :  { %317 = vmatpush1.msra.mxu0 %v2263_v20  ;;  %388 = vmatpush1.msra.mxu1 %v2265_v21  ;;  %v2311_v36 = vld [vmem:[#allocation3 + $0xe0] sm:$0xff]  ;;  %v2313_v37 = vld [vmem:[#allocation3 + $0xf0] sm:$0xff]  ;;  %v2317_v38 = vld [vmem:[#allocation3 + $0xc8] sm:$0xff] }
  0x2a   :  { %318 = vmatprep.subr.mxu0 %v2269_v22  ;;  %389 = vmatprep.subr.mxu1 %v2271_v23  ;;  %v2319_v39 = vld [vmem:[#allocation3 + $0xd8] sm:$0xff]  ;;  %v2323_v40 = vld [vmem:[#allocation3 + $0xc0] sm:$0xff]  ;;  %v2325_v41 = vld [vmem:[#allocation3 + $0xd0] sm:$0xff] }
  0x2b   :  { %319 = vmatpush1.msra.mxu0 %v2275_v24  ;;  %390 = vmatpush1.msra.mxu1 %v2277_v25  ;;  %v2329_v42 = vld [vmem:[#allocation3 + $0xa8] sm:$0xff]  ;;  %v2331_v43 = vld [vmem:[#allocation3 + $0xb8] sm:$0xff]  ;;  %v2335_v44 = vld [vmem:[#allocation3 + $0xa0] sm:$0xff] }
  0x2c   :  { %320 = vmatprep.subr.mxu0 %v2281_v26  ;;  %391 = vmatprep.subr.mxu1 %v2283_v27  ;;  %3280 = vst [vmem:[#allocation14_spill] sm:$0xff] %v2335_v44  ;;  %v2337_v45 = vld [vmem:[#allocation3 + $0xb0] sm:$0xff]  ;;  %v2341_v46 = vld [vmem:[#allocation3 + $0x88] sm:$0xff]  ;;  %v2343_v47 = vld [vmem:[#allocation3 + $0x98] sm:$0xff] }
  0x2d   :  { %321 = vmatpush1.msra.mxu0 %v2287_v28  ;;  %392 = vmatpush1.msra.mxu1 %v2289_v29  ;;  %3281 = vst [vmem:[#allocation15_spill] sm:$0xff] %v2337_v45  ;;  %3282 = vst [vmem:[#allocation16_spill] sm:$0xff] %v2341_v46  ;;  %v2347_v48 = vld [vmem:[#allocation3 + $0x80] sm:$0xff]  ;;  %v2349_v49 = vld [vmem:[#allocation3 + $0x90] sm:$0xff] }
  0x2e   :  { %322 = vmatprep.subr.mxu0 %v2293_v30  ;;  %393 = vmatprep.subr.mxu1 %v2295_v31  ;;  %3283 = vst [vmem:[#allocation17_spill] sm:$0xff] %v2343_v47  ;;  %3284 = vst [vmem:[#allocation18_spill] sm:$0xff] %v2347_v48  ;;  %v2353_v50 = vld [vmem:[#allocation3 + $0x68] sm:$0xff]  ;;  %v2355_v51 = vld [vmem:[#allocation3 + $0x78] sm:$0xff] }
  0x2f   :  { %323 = vmatpush1.msra.mxu0 %v2299_v32  ;;  %394 = vmatpush1.msra.mxu1 %v2301_v33  ;;  %3285 = vst [vmem:[#allocation19_spill] sm:$0xff] %v2349_v49  ;;  %3286 = vst [vmem:[#allocation20_spill] sm:$0xff] %v2353_v50  ;;  %v2359_v52 = vld [vmem:[#allocation3 + $0x60] sm:$0xff]  ;;  %v2361_v53 = vld [vmem:[#allocation3 + $0x70] sm:$0xff] }
  0x30   :  { %324 = vmatprep.subr.mxu0 %v2305_v34  ;;  %395 = vmatprep.subr.mxu1 %v2307_v35  ;;  %3287 = vst [vmem:[#allocation21_spill] sm:$0xff] %v2355_v51  ;;  %3288 = vst [vmem:[#allocation22_spill] sm:$0xff] %v2359_v52  ;;  %v2365_v54 = vld [vmem:[#allocation3 + $0x48] sm:$0xff]  ;;  %v2367_v55 = vld [vmem:[#allocation3 + $0x58] sm:$0xff] }
  0x31   :  { %325 = vmatpush1.msra.mxu0 %v2311_v36  ;;  %396 = vmatpush1.msra.mxu1 %v2313_v37  ;;  %3289 = vst [vmem:[#allocation23_spill] sm:$0xff] %v2361_v53  ;;  %3290 = vst [vmem:[#allocation24_spill] sm:$0xff] %v2365_v54  ;;  %v2371_v56 = vld [vmem:[#allocation3 + $0x40] sm:$0xff]  ;;  %v2373_v57 = vld [vmem:[#allocation3 + $0x50] sm:$0xff] }
  0x32   :  { %326 = vmatprep.subr.mxu0 %v2317_v38  ;;  %397 = vmatprep.subr.mxu1 %v2319_v39  ;;  %3291 = vst [vmem:[#allocation25_spill] sm:$0xff] %v2367_v55  ;;  %3292 = vst [vmem:[#allocation26_spill] sm:$0xff] %v2371_v56  ;;  %v2377_v58 = vld [vmem:[#allocation3 + $0x28] sm:$0xff]  ;;  %v2379_v59 = vld [vmem:[#allocation3 + $0x38] sm:$0xff] }
  0x33   :  { %327 = vmatpush1.msra.mxu0 %v2323_v40  ;;  %398 = vmatpush1.msra.mxu1 %v2325_v41  ;;  %3293 = vst [vmem:[#allocation27_spill] sm:$0xff] %v2373_v57  ;;  %3294 = vst [vmem:[#allocation28_spill] sm:$0xff] %v2377_v58  ;;  %v2383_v60 = vld [vmem:[#allocation3 + $0x20] sm:$0xff]  ;;  %v2385_v61 = vld [vmem:[#allocation3 + $0x30] sm:$0xff] }
  0x34   :  { %328 = vmatprep.subr.mxu0 %v2329_v42  ;;  %399 = vmatprep.subr.mxu1 %v2331_v43  ;;  %3295 = vst [vmem:[#allocation29_spill] sm:$0xff] %v2379_v59  ;;  %3296 = vst [vmem:[#allocation30_spill] sm:$0xff] %v2383_v60  ;;  %v2389_v62 = vld [vmem:[#allocation3 + $0x8] sm:$0xff]  ;;  %v2391_v63 = vld [vmem:[#allocation3 + $0x18] sm:$0xff] }
  0x35   :  { %329 = vmatpush1.msra.mxu0 %v2335_v44  ;;  %400 = vmatpush1.msra.mxu1 %v2337_v45  ;;  %3297 = vst [vmem:[#allocation31_spill] sm:$0xff] %v2385_v61  ;;  %3298 = vst [vmem:[#allocation32_spill] sm:$0xff] %v2389_v62  ;;  %v2395_v1 = vld [vmem:[#allocation3] sm:$0xff]  ;;  %v2397_v0 = vld [vmem:[#allocation3 + $0x10] sm:$0xff] }
  0x36   :  { %330 = vmatprep.subr.mxu0 %v2341_v46  ;;  %401 = vmatprep.subr.mxu1 %v2343_v47  ;;  %3299 = vst [vmem:[#allocation33_spill] sm:$0xff] %v2391_v63  ;;  %3300 = vst [vmem:[#allocation34_spill] sm:$0xff] %v2395_v1 }
  0x37   :  { %331 = vmatpush1.msra.mxu0 %v2347_v48  ;;  %402 = vmatpush1.msra.mxu1 %v2349_v49  ;;  %3301 = vst [vmem:[#allocation35_spill] sm:$0xff] %v2397_v0 }
  0x38   :  { %332 = vmatprep.subr.mxu0 %v2353_v50  ;;  %403 = vmatprep.subr.mxu1 %v2355_v51 }
  0x39   :  { %333 = vmatpush1.msra.mxu0 %v2359_v52  ;;  %404 = vmatpush1.msra.mxu1 %v2361_v53 }
  0x3a   :  { %334 = vmatprep.subr.mxu0 %v2365_v54  ;;  %405 = vmatprep.subr.mxu1 %v2367_v55 }
  0x3b   :  { %335 = vmatpush1.msra.mxu0 %v2371_v56  ;;  %406 = vmatpush1.msra.mxu1 %v2373_v57  ;;  %v52_v57 = vld [vmem:[%s3158_s0] sm:$0xff] }
  0x3c   :  { %336 = vmatprep.subr.mxu0 %v2377_v58  ;;  %407 = vmatprep.subr.mxu1 %v2379_v59  ;;  %v3302_v59 = vmov 0.0  }
  0x3d   :  { %337 = vmatpush1.msra.mxu0 %v2383_v60  ;;  %408 = vmatpush1.msra.mxu1 %v2385_v61 }
  0x3e   :  { %338 = vmatprep.subr.mxu0 %v2389_v62  ;;  %409 = vmatprep.subr.mxu1 %v2391_v63  ;;  %v53_v62 = vld [vmem:[%s3158_s0 + $0x8] sm:$0xff] }
  0x3f   :  { %339 = vmatpush1.msra.mxu0 %v2395_v1  ;;  %410 = vmatpush1.msra.mxu1 %v2397_v0 }
  0x40   :  { %373 = vmatmul.mubr.f32.vlgmr.msra.gmra.mxu0 %v3302_v59  ;;  %444 = vmatmul.mubr.f32.vlgmr.msra.gmra.mxu1 %v3302_v59 }
  0x41   :  { %64 = vperm.xlu0 %1900, %v52_v57   ;;  %483 = vmatprep.subr.mxu0 %v2213_v2  ;;  %v56_v57 = vld [vmem:[%s3158_s0 + $0x20] sm:$0xff] }
  0x42   :  { %554 = vmatprep.subr.mxu1 %v2215_v3  ;;  %484 = vmatpush1.msra.mxu0 %v2217_v4 }
  0x43   :  { %555 = vmatpush1.msra.mxu1 %v2221_v5  ;;  %485 = vmatprep.subr.mxu0 %v2223_v6 }
  0x44   :  { %556 = vmatprep.subr.mxu1 %v2225_v7  ;;  %486 = vmatpush1.msra.mxu0 %v2229_v8 }
  0x45   :  { %69 = vperm.xlu0 %1900, %v53_v62   ;;  %557 = vmatpush1.msra.mxu1 %v2231_v9  ;;  %v58_v62 = vld [vmem:[%s3158_s0 + $0x30] sm:$0xff] }
  0x46   :  { %487 = vmatprep.subr.mxu0 %v2233_v10  ;;  %558 = vmatprep.subr.mxu1 %v2237_v11 }
  0x47   :  { %488 = vmatpush1.msra.mxu0 %v2239_v12  ;;  %559 = vmatpush1.msra.mxu1 %v2241_v13 }
  0x48   :  { %489 = vmatprep.subr.mxu0 %v2245_v14  ;;  %560 = vmatprep.subr.mxu1 %v2247_v15 }
  0x49   :  { %84 = vperm.xlu0 %1900, %v56_v57   ;;  %490 = vmatpush1.msra.mxu0 %v2251_v16  ;;  %v3303_v57 = vld [vmem:[#allocation27_spill] sm:$0xff] }
  0x4a   :  { %561 = vmatpush1.msra.mxu1 %v2253_v17  ;;  %491 = vmatprep.subr.mxu0 %v2257_v18 }
  0x4b   :  { %562 = vmatprep.subr.mxu1 %v2259_v19  ;;  %492 = vmatpush1.msra.mxu0 %v2263_v20 }
  0x4c   :  { %563 = vmatpush1.msra.mxu1 %v2265_v21  ;;  %493 = vmatprep.subr.mxu0 %v2269_v22 }
  0x4d   :  { %94 = vperm.xlu0 %1900, %v58_v62   ;;  %564 = vmatprep.subr.mxu1 %v2271_v23  ;;  %v3304_v62 = vld [vmem:[#allocation29_spill] sm:$0xff] }
  0x4e   :  { %494 = vmatpush1.msra.mxu0 %v2275_v24  ;;  %565 = vmatpush1.msra.mxu1 %v2277_v25 }
  0x4f   :  { %495 = vmatprep.subr.mxu0 %v2281_v26  ;;  %566 = vmatprep.subr.mxu1 %v2283_v27 }
  0x50   :  { %496 = vmatpush1.msra.mxu0 %v2287_v28  ;;  %567 = vmatpush1.msra.mxu1 %v2289_v29 }
  0x51   :  { %497 = vmatprep.subr.mxu0 %v2293_v30  ;;  %568 = vmatprep.subr.mxu1 %v2295_v31 }
  0x52   :  { %498 = vmatpush1.msra.mxu0 %v2299_v32  ;;  %569 = vmatpush1.msra.mxu1 %v2301_v33 }
  0x53   :  { %499 = vmatprep.subr.mxu0 %v2305_v34  ;;  %570 = vmatprep.subr.mxu1 %v2307_v35 }
  0x54   :  { %500 = vmatpush1.msra.mxu0 %v2311_v36  ;;  %571 = vmatpush1.msra.mxu1 %v2313_v37 }
  0x55   :  { %501 = vmatprep.subr.mxu0 %v2317_v38  ;;  %572 = vmatprep.subr.mxu1 %v2319_v39 }
  0x56   :  { %502 = vmatpush1.msra.mxu0 %v2323_v40  ;;  %573 = vmatpush1.msra.mxu1 %v2325_v41 }
  0x57   :  { %503 = vmatprep.subr.mxu0 %v2329_v42  ;;  %574 = vmatprep.subr.mxu1 %v2331_v43 }
  0x58   :  { %504 = vmatpush1.msra.mxu0 %v2335_v44  ;;  %575 = vmatpush1.msra.mxu1 %v2337_v45 }
  0x59   :  { %505 = vmatprep.subr.mxu0 %v2341_v46  ;;  %576 = vmatprep.subr.mxu1 %v2343_v47 }
  0x5a   :  { %506 = vmatpush1.msra.mxu0 %v2347_v48  ;;  %577 = vmatpush1.msra.mxu1 %v2349_v49 }
  0x5b   :  { %507 = vmatprep.subr.mxu0 %v2353_v50  ;;  %578 = vmatprep.subr.mxu1 %v2355_v51  ;;  %v3305_v51 = vld [vmem:[#allocation32_spill] sm:$0xff] }
  0x5c   :  { %508 = vmatpush1.msra.mxu0 %v2359_v52  ;;  %579 = vmatpush1.msra.mxu1 %v2361_v53 }
  0x5d   :  { %509 = vmatprep.subr.mxu0 %v2365_v54  ;;  %580 = vmatprep.subr.mxu1 %v2367_v55 }
  0x5e   :  { %510 = vmatpush1.msra.mxu0 %v2371_v56  ;;  %581 = vmatpush1.msra.mxu1 %v3303_v57 }
  0x5f   :  { %511 = vmatprep.subr.mxu0 %v2377_v58  ;;  %582 = vmatprep.subr.mxu1 %v3304_v62  ;;  %v103_v62 = vlaneseq }
  0x60   :  { %512 = vmatpush1.msra.mxu0 %v2383_v60  ;;  %583 = vmatpush1.msra.mxu1 %v2385_v61 }
  0x61   :  { %513 = vmatprep.subr.mxu0 %v3305_v51  ;;  %584 = vmatprep.subr.mxu1 %v2391_v63  ;;  %v104_v60 = vshrl.u32 %v103_v62, 7  ;;  %v60_v51 = vld [vmem:[%s3159_s1] sm:$0xf] }
  0x62   :  { %514 = vmatpush1.msra.mxu0 %v2395_v1  ;;  %547 = vmatprep.mubr.f32.mxu0 %v3302_v59 }
  0x63   :  { %585 = vmatpush1.msra.mxu1 %v2397_v0  ;;  %618 = vmatprep.mubr.f32.mxu1 %v3302_v59  ;;  %v105_v58 = vsub.s32 0, %v104_v60  ;;  %v109_v63 = vsub.s32 1, %v104_v60  ;;  %v61_v0 = vld [vmem:[%s3161_s3] sm:$0xf]  ;;  %v117_v56 = vsub.s32 3, %v104_v60  ;;  %v113_v49 = vsub.s32 2, %v104_v60 }
  0x64   :  { %658 = vmatprep.subr.mxu0 %v2213_v2  ;;  %729 = vmatprep.subr.mxu1 %v2215_v3 }
  0x65   :  { %v2490_v61 = vrot.slane %v60_v51, %v105_v58  ;;  %v2495_v1 = vrot.slane %v60_v51, %v109_v63  ;;  %v2498_v3 = vrot.slane %v61_v0, %v105_v58  ;;  %v2501_v57 = vrot.slane %v61_v0, %v109_v63 }
  0x66   :  { %v2505_v53 = vrot.slane %v60_v51, %v117_v56  ;;  %v2510_v45 = vrot.slane %v60_v51, %v113_v49 }
  0x67   :  { %3306 = vst [vmem:[#allocation36_spill] sm:$0xff] %v2490_v61  ;;  %3307 = vst [vmem:[#allocation37_spill] sm:$0xff] %v2495_v1 }
  0x68   :  { %3308 = vst [vmem:[#allocation38_spill] sm:$0xff] %v2501_v57 }
  0xbc   :  { %v65_v59 = vpop.permute.xlu0 %64 }
  0xbd   :  { %v123_v2 = vmul.f32 %v2490_v61, %v65_v59  ;;  %v124_v62 = vmul.f32 %v2495_v1, %v65_v59  ;;  %v126_v58 = vmul.f32 %v2505_v53, %v65_v59  ;;  %v2508_v61 = vrot.slane %v61_v0, %v117_v56 }
  0xbf   :  { %v176_v55 = vadd.f32 %v2498_v3, %v123_v2  ;;  %v177_v54 = vadd.f32 %v2501_v57, %v124_v62  ;;  %3309 = vst [vmem:[#allocation39_spill] sm:$0xff] %v2508_v61  ;;  %v179_v2 = vadd.f32 %v2508_v61, %v126_v58  ;;  %v125_v57 = vmul.f32 %v2510_v45, %v65_v59 }
 0x100   :  { %v374_v52 = vpop.f32.mrf.mxu0  ;;  %v445_v63 = vpop.f32.mrf.mxu1 }
 0x101   :  { %v450_v50 = vadd.f32 %v374_v52, %v176_v55  ;;  %v2514_v52 = vrot.slane %v61_v0, %v113_v49 }
 0x102   :  { %v376_v48 = vpop.f32.mrf.mxu0  ;;  %v447_v62 = vpop.f32.mrf.mxu1 }
 0x103   :  { %v1813_v47 = vmul.f32 -1.442695, %v450_v50  ;;  %v451_v46 = vadd.f32 %v376_v48, %v177_v54  ;;  %v453_v55 = vadd.f32 %v447_v62, %v179_v2  ;;  %v178_v48 = vadd.f32 %v2514_v52, %v125_v57 }
 0x105   :  { %1902 = vpow2.f32 %v1813_v47  ;;  %v1814_v1 = vmul.f32 -1.442695, %v451_v46  ;;  %v1815_v50 = vmul.f32 -1.442695, %v453_v55  ;;  %v452_v56 = vadd.f32 %v445_v63, %v178_v48  ;;  %v3311_v55 = vld [vmem:[#allocation16_spill] sm:$0xff]  ;;  %v3312_v48 = vld [vmem:[#allocation17_spill] sm:$0xff] }
 0x107   :  { %1904 = vpow2.f32 %v1814_v1 }
 0x108   :  { %1906 = vpow2.f32 %v1815_v50  ;;  %v3313_v50 = vld [vmem:[#allocation18_spill] sm:$0xff] }
 0x112   :  { %v1903_v54 = vpop.eup %1902 }
 0x113   :  { %v457_v60 = vadd.f32 1.0, %v1903_v54  ;;  %v3314_v54 = vld [vmem:[#allocation19_spill] sm:$0xff] }
 0x114   :  { %v1905_v47 = vpop.eup %1904 }
 0x115   :  { %1908 = vrcp.f32 %v457_v60  ;;  %v463_v46 = vadd.f32 1.0, %v1905_v47  ;;  %v1907_v51 = vpop.eup %1906  ;;  %v3316_v60 = vld [vmem:[#allocation21_spill] sm:$0xff]  ;;  %v3317_v47 = vld [vmem:[#allocation22_spill] sm:$0xff] }
 0x116   :  { %1910 = vtanh.f32 %v452_v56  ;;  %v470_v59 = vadd.f32 1.0, %v1907_v51  ;;  %v3315_v56 = vld [vmem:[#allocation20_spill] sm:$0xff] }
 0x117   :  { %1912 = vrcp.f32 %v463_v46  ;;  %v3318_v46 = vld [vmem:[#allocation23_spill] sm:$0xff]  ;;  %v3319_v51 = vld [vmem:[#allocation24_spill] sm:$0xff] }
 0x118   :  { %1914 = vrcp.f32 %v470_v59  ;;  %v3322_v59 = vld [vmem:[#allocation27_spill] sm:$0xff] }
 0x122   :  { %v1909_v1 = vpop.eup %1908 }
 0x123   :  { %v1911_v58 = vpop.eup %1910 }
 0x124   :  { %v1913_v61 = vpop.eup %1912  ;;  %v474_v49 = vmul.f32 %v1911_v58, %v1909_v1  ;;  %v3320_v1 = vld [vmem:[#allocation25_spill] sm:$0xff]  ;;  %v3321_v58 = vld [vmem:[#allocation26_spill] sm:$0xff] }
 0x125   :  { %v473_v0 = vmul.f32 0.0, %v1913_v61  ;;  %v1915_v57 = vpop.eup %1914  ;;  %v3310_v61 = vld [vmem:[#allocation15_spill] sm:$0xff] }
 0x127   :  { %v2517_v2 = vadd.f32 %v474_v49, %v473_v0  ;;  %v3323_v0 = vld [vmem:[#allocation28_spill] sm:$0xff]  ;;  %v3324_v49 = vld [vmem:[#allocation29_spill] sm:$0xff] }
 0x129   :  { %1916 = vtanh.f32 %v2517_v2 }
 0x136   :  { %v1917_v63 = vpop.eup %1916 }
 0x137   :  { %v477_v62 = vmul.f32 %v1917_v63, %v1915_v57  ;;  %v3325_v57 = vld [vmem:[#allocation30_spill] sm:$0xff]  ;;  %v3326_v63 = vld [vmem:[#allocation31_spill] sm:$0xff] }
 0x139   :  { %548 = vmatmul.mubr.f32.vlgmr.msra.gmra.mxu0 %v477_v62  ;;  %619 = vmatmul.mubr.f32.vlgmr.msra.gmra.mxu1 %v477_v62  ;;  %v3327_v62 = vld [vmem:[#allocation32_spill] sm:$0xff] }
 0x13a   :  { %659 = vmatpush1.msra.mxu0 %v2217_v4  ;;  %730 = vmatpush1.msra.mxu1 %v2221_v5 }
 0x13b   :  { %660 = vmatprep.subr.mxu0 %v2223_v6  ;;  %731 = vmatprep.subr.mxu1 %v2225_v7 }
 0x13c   :  { %661 = vmatpush1.msra.mxu0 %v2229_v8  ;;  %732 = vmatpush1.msra.mxu1 %v2231_v9 }
 0x13d   :  { %662 = vmatprep.subr.mxu0 %v2233_v10  ;;  %733 = vmatprep.subr.mxu1 %v2237_v11 }
 0x13e   :  { %663 = vmatpush1.msra.mxu0 %v2239_v12  ;;  %734 = vmatpush1.msra.mxu1 %v2241_v13 }
 0x13f   :  { %664 = vmatprep.subr.mxu0 %v2245_v14  ;;  %735 = vmatprep.subr.mxu1 %v2247_v15 }
 0x140   :  { %665 = vmatpush1.msra.mxu0 %v2251_v16  ;;  %736 = vmatpush1.msra.mxu1 %v2253_v17 }
 0x141   :  { %666 = vmatprep.subr.mxu0 %v2257_v18  ;;  %737 = vmatprep.subr.mxu1 %v2259_v19 }
 0x142   :  { %667 = vmatpush1.msra.mxu0 %v2263_v20  ;;  %738 = vmatpush1.msra.mxu1 %v2265_v21 }
 0x143   :  { %668 = vmatprep.subr.mxu0 %v2269_v22  ;;  %739 = vmatprep.subr.mxu1 %v2271_v23 }
 0x144   :  { %669 = vmatpush1.msra.mxu0 %v2275_v24  ;;  %740 = vmatpush1.msra.mxu1 %v2277_v25 }
 0x145   :  { %670 = vmatprep.subr.mxu0 %v2281_v26  ;;  %741 = vmatprep.subr.mxu1 %v2283_v27 }
 0x146   :  { %671 = vmatpush1.msra.mxu0 %v2287_v28  ;;  %742 = vmatpush1.msra.mxu1 %v2289_v29 }
 0x147   :  { %672 = vmatprep.subr.mxu0 %v2293_v30  ;;  %743 = vmatprep.subr.mxu1 %v2295_v31 }
 0x148   :  { %673 = vmatpush1.msra.mxu0 %v2299_v32  ;;  %744 = vmatpush1.msra.mxu1 %v2301_v33 }
 0x149   :  { %674 = vmatprep.subr.mxu0 %v2305_v34  ;;  %745 = vmatprep.subr.mxu1 %v2307_v35 }
 0x14a   :  { %675 = vmatpush1.msra.mxu0 %v2311_v36  ;;  %746 = vmatpush1.msra.mxu1 %v2313_v37 }
 0x14b   :  { %676 = vmatprep.subr.mxu0 %v2317_v38  ;;  %747 = vmatprep.subr.mxu1 %v2319_v39 }
 0x14c   :  { %677 = vmatpush1.msra.mxu0 %v2323_v40  ;;  %748 = vmatpush1.msra.mxu1 %v2325_v41 }
 0x14d   :  { %678 = vmatprep.subr.mxu0 %v2329_v42  ;;  %749 = vmatprep.subr.mxu1 %v2331_v43 }
 0x14e   :  { %679 = vmatpush1.msra.mxu0 %v2335_v44  ;;  %750 = vmatpush1.msra.mxu1 %v3310_v61  ;;  %v3337_v61 = vld [vmem:[#allocation39_spill] sm:$0xff] }
 0x14f   :  { %680 = vmatprep.subr.mxu0 %v3311_v55  ;;  %751 = vmatprep.subr.mxu1 %v3312_v48 }
 0x150   :  { %681 = vmatpush1.msra.mxu0 %v3313_v50  ;;  %752 = vmatpush1.msra.mxu1 %v3314_v54 }
 0x151   :  { %682 = vmatprep.subr.mxu0 %v3315_v56  ;;  %753 = vmatprep.subr.mxu1 %v3316_v60 }
 0x152   :  { %683 = vmatpush1.msra.mxu0 %v3317_v47  ;;  %754 = vmatpush1.msra.mxu1 %v3318_v46  ;;  %v3328_v47 = vld [vmem:[#allocation33_spill] sm:$0xff]  ;;  %v3329_v46 = vld [vmem:[#allocation34_spill] sm:$0xff] }
 0x153   :  { %684 = vmatprep.subr.mxu0 %v3319_v51  ;;  %755 = vmatprep.subr.mxu1 %v3320_v1  ;;  %v3330_v51 = vmov 0.0   ;;  %v3331_v1 = vld [vmem:[#allocation35_spill] sm:$0xff] }
 0x154   :  { %685 = vmatpush1.msra.mxu0 %v3321_v58  ;;  %756 = vmatpush1.msra.mxu1 %v3322_v59  ;;  %v3332_v59 = vld [vmem:[#allocation12_spill] sm:$0xff] }
 0x155   :  { %686 = vmatprep.subr.mxu0 %v3323_v0  ;;  %757 = vmatprep.subr.mxu1 %v3324_v49  ;;  %v3333_v0 = vld [vmem:[#allocation13_spill] sm:$0xff] }
 0x156   :  { %687 = vmatpush1.msra.mxu0 %v3325_v57  ;;  %758 = vmatpush1.msra.mxu1 %v3326_v63  ;;  %v54_v63 = vld [vmem:[%s3158_s0 + $0x10] sm:$0xff] }
 0x157   :  { %688 = vmatprep.subr.mxu0 %v3327_v62  ;;  %759 = vmatprep.subr.mxu1 %v3328_v47  ;;  %v55_v47 = vld [vmem:[%s3158_s0 + $0x18] sm:$0xff]  ;;  %v3335_v62 = vld [vmem:[#allocation37_spill] sm:$0xff] }
 0x158   :  { %689 = vmatpush1.msra.mxu0 %v3329_v46  ;;  %722 = vmatprep.mubr.f32.mxu0 %v3330_v51 }
 0x159   :  { %760 = vmatpush1.msra.mxu1 %v3331_v1  ;;  %793 = vmatprep.mubr.f32.mxu1 %v3330_v51  ;;  %v57_v1 = vld [vmem:[%s3158_s0 + $0x28] sm:$0xff] }
 0x15a   :  { %833 = vmatprep.subr.mxu0 %v3332_v59  ;;  %904 = vmatprep.subr.mxu1 %v3333_v0  ;;  %v59_v59 = vld [vmem:[%s3158_s0 + $0x38] sm:$0xff]  ;;  %v70_v0 = vpop.permute.xlu0 %69  ;;  %v3334_v51 = vld [vmem:[#allocation36_spill] sm:$0xff] }
 0x15b   :  { %74 = vperm.xlu1 %1901, %v54_v63   ;;  %v127_v46 = vmul.f32 %v3334_v51, %v70_v0  ;;  %v128_v63 = vmul.f32 %v3335_v62, %v70_v0  ;;  %v130_v55 = vmul.f32 %v2505_v53, %v70_v0  ;;  %v129_v62 = vmul.f32 %v2510_v45, %v70_v0 }
 0x15d   :  { %v180_v57 = vadd.f32 %v2498_v3, %v127_v46  ;;  %v183_v51 = vadd.f32 %v3337_v61, %v130_v55  ;;  %v182_v46 = vadd.f32 %v2514_v52, %v129_v62 }
 0x15f   :  { %79 = vperm.xlu1 %1901, %v55_v47   ;;  %v3336_v47 = vld [vmem:[#allocation38_spill] sm:$0xff] }
 0x160   :  { %v181_v60 = vadd.f32 %v3336_v47, %v128_v63 }
 0x163   :  { %89 = vperm.xlu1 %1901, %v57_v1  }
 0x167   :  { %99 = vperm.xlu1 %1901, %v59_v59  }
 0x1f9   :  { %v549_v49 = vpop.f32.mrf.mxu0  ;;  %v620_v1 = vpop.f32.mrf.mxu1 }
 0x1fa   :  { %v625_v58 = vadd.f32 %v549_v49, %v180_v57  ;;  %v627_v63 = vadd.f32 %v620_v1, %v182_v46  ;;  %v3342_v46 = vld [vmem:[#allocation18_spill] sm:$0xff] }
 0x1fb   :  { %v551_v56 = vpop.f32.mrf.mxu0  ;;  %v622_v59 = vpop.f32.mrf.mxu1 }
 0x1fc   :  { %v1816_v54 = vmul.f32 -1.442695, %v625_v58  ;;  %v626_v50 = vadd.f32 %v551_v56, %v181_v60  ;;  %v628_v44 = vadd.f32 %v622_v59, %v183_v51  ;;  %v3341_v59 = vld [vmem:[#allocation17_spill] sm:$0xff] }
 0x1fe   :  { %1918 = vpow2.f32 %v1816_v54  ;;  %v1817_v48 = vmul.f32 -1.442695, %v626_v50  ;;  %v1818_v49 = vmul.f32 -1.442695, %v628_v44 }
 0x200   :  { %1920 = vpow2.f32 %v1817_v48 }
 0x201   :  { %1922 = vpow2.f32 %v1818_v49  ;;  %v3343_v49 = vld [vmem:[#allocation19_spill] sm:$0xff] }
 0x20b   :  { %v1919_v57 = vpop.eup %1918 }
 0x20c   :  { %v632_v47 = vadd.f32 1.0, %v1919_v57  ;;  %v3344_v57 = vld [vmem:[#allocation20_spill] sm:$0xff] }
 0x20d   :  { %v1921_v58 = vpop.eup %1920 }
 0x20e   :  { %1924 = vrcp.f32 %v632_v47  ;;  %v638_v54 = vadd.f32 1.0, %v1921_v58  ;;  %v1923_v50 = vpop.eup %1922  ;;  %v3340_v47 = vld [vmem:[#allocation16_spill] sm:$0xff]  ;;  %v3346_v58 = vld [vmem:[#allocation22_spill] sm:$0xff] }
 0x20f   :  { %1926 = vtanh.f32 %v627_v63  ;;  %v645_v55 = vadd.f32 1.0, %v1923_v50  ;;  %v3345_v63 = vld [vmem:[#allocation21_spill] sm:$0xff]  ;;  %v3348_v50 = vld [vmem:[#allocation24_spill] sm:$0xff] }
 0x210   :  { %1928 = vrcp.f32 %v638_v54  ;;  %v3347_v54 = vld [vmem:[#allocation23_spill] sm:$0xff] }
 0x211   :  { %1930 = vrcp.f32 %v645_v55  ;;  %v3352_v55 = vld [vmem:[#allocation28_spill] sm:$0xff] }
 0x21b   :  { %v1925_v48 = vpop.eup %1924 }
 0x21c   :  { %v1927_v56 = vpop.eup %1926 }
 0x21d   :  { %v1929_v60 = vpop.eup %1928  ;;  %v649_v61 = vmul.f32 %v1927_v56, %v1925_v48  ;;  %v3349_v48 = vld [vmem:[#allocation25_spill] sm:$0xff]  ;;  %v3350_v56 = vld [vmem:[#allocation26_spill] sm:$0xff] }
 0x21e   :  { %v648_v51 = vmul.f32 %v1929_v60, %v2517_v2  ;;  %v1931_v44 = vpop.eup %1930  ;;  %v3338_v2 = vld [vmem:[#allocation14_spill] sm:$0xff]  ;;  %v3351_v60 = vld [vmem:[#allocation27_spill] sm:$0xff] }
 0x220   :  { %v2607_v0 = vadd.f32 %v649_v61, %v648_v51  ;;  %v3339_v61 = vld [vmem:[#allocation15_spill] sm:$0xff]  ;;  %v3353_v51 = vld [vmem:[#allocation29_spill] sm:$0xff] }
 0x222   :  { %1932 = vtanh.f32 %v2607_v0 }
 0x22f   :  { %v1933_v62 = vpop.eup %1932 }
 0x230   :  { %v652_v1 = vmul.f32 %v1933_v62, %v1931_v44  ;;  %v3354_v44 = vld [vmem:[#allocation30_spill] sm:$0xff]  ;;  %v3355_v62 = vld [vmem:[#allocation31_spill] sm:$0xff] }
 0x232   :  { %723 = vmatmul.mubr.f32.vlgmr.msra.gmra.mxu0 %v652_v1  ;;  %794 = vmatmul.mubr.f32.vlgmr.msra.gmra.mxu1 %v652_v1  ;;  %v3356_v1 = vld [vmem:[#allocation32_spill] sm:$0xff] }
 0x233   :  { %834 = vmatpush1.msra.mxu0 %v2217_v4  ;;  %905 = vmatpush1.msra.mxu1 %v2221_v5 }
 0x234   :  { %835 = vmatprep.subr.mxu0 %v2223_v6  ;;  %906 = vmatprep.subr.mxu1 %v2225_v7 }
 0x235   :  { %836 = vmatpush1.msra.mxu0 %v2229_v8  ;;  %907 = vmatpush1.msra.mxu1 %v2231_v9 }
 0x236   :  { %837 = vmatprep.subr.mxu0 %v2233_v10  ;;  %908 = vmatprep.subr.mxu1 %v2237_v11 }
 0x237   :  { %838 = vmatpush1.msra.mxu0 %v2239_v12  ;;  %909 = vmatpush1.msra.mxu1 %v2241_v13 }
 0x238   :  { %839 = vmatprep.subr.mxu0 %v2245_v14  ;;  %910 = vmatprep.subr.mxu1 %v2247_v15 }
 0x239   :  { %840 = vmatpush1.msra.mxu0 %v2251_v16  ;;  %911 = vmatpush1.msra.mxu1 %v2253_v17 }
 0x23a   :  { %841 = vmatprep.subr.mxu0 %v2257_v18  ;;  %912 = vmatprep.subr.mxu1 %v2259_v19 }
 0x23b   :  { %842 = vmatpush1.msra.mxu0 %v2263_v20  ;;  %913 = vmatpush1.msra.mxu1 %v2265_v21 }
 0x23c   :  { %843 = vmatprep.subr.mxu0 %v2269_v22  ;;  %914 = vmatprep.subr.mxu1 %v2271_v23 }
 0x23d   :  { %844 = vmatpush1.msra.mxu0 %v2275_v24  ;;  %915 = vmatpush1.msra.mxu1 %v2277_v25 }
 0x23e   :  { %845 = vmatprep.subr.mxu0 %v2281_v26  ;;  %916 = vmatprep.subr.mxu1 %v2283_v27 }
 0x23f   :  { %846 = vmatpush1.msra.mxu0 %v2287_v28  ;;  %917 = vmatpush1.msra.mxu1 %v2289_v29 }
 0x240   :  { %847 = vmatprep.subr.mxu0 %v2293_v30  ;;  %918 = vmatprep.subr.mxu1 %v2295_v31 }
 0x241   :  { %848 = vmatpush1.msra.mxu0 %v2299_v32  ;;  %919 = vmatpush1.msra.mxu1 %v2301_v33 }
 0x242   :  { %849 = vmatprep.subr.mxu0 %v2305_v34  ;;  %920 = vmatprep.subr.mxu1 %v2307_v35 }
 0x243   :  { %850 = vmatpush1.msra.mxu0 %v2311_v36  ;;  %921 = vmatpush1.msra.mxu1 %v2313_v37 }
 0x244   :  { %851 = vmatprep.subr.mxu0 %v2317_v38  ;;  %922 = vmatprep.subr.mxu1 %v2319_v39 }
 0x245   :  { %852 = vmatpush1.msra.mxu0 %v2323_v40  ;;  %923 = vmatpush1.msra.mxu1 %v2325_v41 }
 0x246   :  { %853 = vmatprep.subr.mxu0 %v2329_v42  ;;  %924 = vmatprep.subr.mxu1 %v2331_v43 }
 0x247   :  { %854 = vmatpush1.msra.mxu0 %v3338_v2  ;;  %925 = vmatpush1.msra.mxu1 %v3339_v61 }
 0x248   :  { %855 = vmatprep.subr.mxu0 %v3340_v47  ;;  %926 = vmatprep.subr.mxu1 %v3341_v59 }
 0x249   :  { %856 = vmatpush1.msra.mxu0 %v3342_v46  ;;  %927 = vmatpush1.msra.mxu1 %v3343_v49 }
 0x24a   :  { %857 = vmatprep.subr.mxu0 %v3344_v57  ;;  %928 = vmatprep.subr.mxu1 %v3345_v63 }
 0x24b   :  { %858 = vmatpush1.msra.mxu0 %v3346_v58  ;;  %929 = vmatpush1.msra.mxu1 %v3347_v54  ;;  %v3357_v58 = vld [vmem:[#allocation33_spill] sm:$0xff]  ;;  %v3358_v54 = vld [vmem:[#allocation34_spill] sm:$0xff] }
 0x24c   :  { %859 = vmatprep.subr.mxu0 %v3348_v50  ;;  %930 = vmatprep.subr.mxu1 %v3349_v48  ;;  %v3359_v50 = vmov 0.0   ;;  %v3360_v48 = vld [vmem:[#allocation35_spill] sm:$0xff] }
 0x24d   :  { %860 = vmatpush1.msra.mxu0 %v3350_v56  ;;  %931 = vmatpush1.msra.mxu1 %v3351_v60  ;;  %v3361_v60 = vld [vmem:[#allocation12_spill] sm:$0xff] }
 0x24e   :  { %861 = vmatprep.subr.mxu0 %v3352_v55  ;;  %932 = vmatprep.subr.mxu1 %v3353_v51  ;;  %v3362_v55 = vld [vmem:[#allocation13_spill] sm:$0xff]  ;;  %v75_v51 = vpop.permute.xlu1 %74 }
 0x24f   :  { %862 = vmatpush1.msra.mxu0 %v3354_v44  ;;  %933 = vmatpush1.msra.mxu1 %v3355_v62  ;;  %v3363_v44 = vld [vmem:[#allocation36_spill] sm:$0xff]  ;;  %v3364_v62 = vld [vmem:[#allocation37_spill] sm:$0xff] }
 0x250   :  { %863 = vmatprep.subr.mxu0 %v3356_v1  ;;  %934 = vmatprep.subr.mxu1 %v3357_v58  ;;  %v131_v56 = vmul.f32 %v3363_v44, %v75_v51  ;;  %v132_v63 = vmul.f32 %v3364_v62, %v75_v51  ;;  %v3365_v58 = vld [vmem:[#allocation38_spill] sm:$0xff]  ;;  %v133_v62 = vmul.f32 %v2510_v45, %v75_v51 }
 0x251   :  { %864 = vmatpush1.msra.mxu0 %v3358_v54  ;;  %897 = vmatprep.mubr.f32.mxu0 %v3359_v50 }
 0x252   :  { %935 = vmatpush1.msra.mxu1 %v3360_v48  ;;  %968 = vmatprep.mubr.f32.mxu1 %v3359_v50  ;;  %v184_v1 = vadd.f32 %v2498_v3, %v131_v56  ;;  %v185_v57 = vadd.f32 %v3365_v58, %v132_v63  ;;  %v134_v50 = vmul.f32 %v2505_v53, %v75_v51 }
 0x253   :  { %1008 = vmatprep.subr.mxu0 %v3361_v60  ;;  %1079 = vmatprep.subr.mxu1 %v3362_v55  ;;  %v3366_v55 = vld [vmem:[#allocation39_spill] sm:$0xff]  ;;  %v186_v56 = vadd.f32 %v2514_v52, %v133_v62 }
 0x254   :  { %v187_v61 = vadd.f32 %v3366_v55, %v134_v50 }
 0x2f2   :  { %v724_v54 = vpop.f32.mrf.mxu0  ;;  %v795_v60 = vpop.f32.mrf.mxu1 }
 0x2f3   :  { %v800_v49 = vadd.f32 %v724_v54, %v184_v1  ;;  %v802_v54 = vadd.f32 %v795_v60, %v186_v56  ;;  %v3395_v60 = vld [vmem:[#allocation39_spill] sm:$0xff] }
 0x2f4   :  { %v726_v46 = vpop.f32.mrf.mxu0  ;;  %v797_v44 = vpop.f32.mrf.mxu1 }
 0x2f5   :  { %v1819_v59 = vmul.f32 -1.442695, %v800_v49  ;;  %v801_v48 = vadd.f32 %v726_v46, %v185_v57  ;;  %v803_v2 = vadd.f32 %v797_v44, %v187_v61 }
 0x2f7   :  { %1934 = vpow2.f32 %v1819_v59  ;;  %v1820_v47 = vmul.f32 -1.442695, %v801_v48  ;;  %v1821_v63 = vmul.f32 -1.442695, %v803_v2 }
 0x2f9   :  { %1936 = vpow2.f32 %v1820_v47 }
 0x2fa   :  { %1938 = vpow2.f32 %v1821_v63 }
 0x304   :  { %v1935_v58 = vpop.eup %1934 }
 0x305   :  { %v807_v1 = vadd.f32 1.0, %v1935_v58 }
 0x306   :  { %v1937_v49 = vpop.eup %1936 }
 0x307   :  { %1940 = vrcp.f32 %v807_v1  ;;  %v813_v46 = vadd.f32 1.0, %v1937_v49  ;;  %v1939_v59 = vpop.eup %1938 }
 0x308   :  { %1942 = vtanh.f32 %v802_v54  ;;  %v820_v48 = vadd.f32 1.0, %v1939_v59 }
 0x309   :  { %1944 = vrcp.f32 %v813_v46 }
 0x30a   :  { %1946 = vrcp.f32 %v820_v48 }
 0x314   :  { %v1941_v47 = vpop.eup %1940 }
 0x315   :  { %v1943_v57 = vpop.eup %1942 }
 0x316   :  { %v1945_v50 = vpop.eup %1944  ;;  %v824_v55 = vmul.f32 %v1943_v57, %v1941_v47 }
 0x317   :  { %v823_v61 = vmul.f32 %v1945_v50, %v2607_v0  ;;  %v1947_v2 = vpop.eup %1946 }
 0x319   :  { %v2685_v51 = vadd.f32 %v824_v55, %v823_v61 }
 0x31b   :  { %1948 = vtanh.f32 %v2685_v51 }
 0x328   :  { %v1949_v58 = vpop.eup %1948 }
 0x329   :  { %v827_v44 = vmul.f32 %v1949_v58, %v1947_v2 }
 0x32b   :  { %898 = vmatmul.mubr.f32.vlgmr.msra.gmra.mxu0 %v827_v44  ;;  %969 = vmatmul.mubr.f32.vlgmr.msra.gmra.mxu1 %v827_v44 }
 0x32c   :  { %1009 = vmatpush1.msra.mxu0 %v2217_v4  ;;  %1080 = vmatpush1.msra.mxu1 %v2221_v5  ;;  %v3367_v4 = vld [vmem:[#allocation14_spill] sm:$0xff]  ;;  %v3368_v5 = vld [vmem:[#allocation15_spill] sm:$0xff] }
 0x32d   :  { %1010 = vmatprep.subr.mxu0 %v2223_v6  ;;  %1081 = vmatprep.subr.mxu1 %v2225_v7  ;;  %v3369_v6 = vld [vmem:[#allocation16_spill] sm:$0xff]  ;;  %v3370_v7 = vld [vmem:[#allocation17_spill] sm:$0xff] }
 0x32e   :  { %1011 = vmatpush1.msra.mxu0 %v2229_v8  ;;  %1082 = vmatpush1.msra.mxu1 %v2231_v9  ;;  %v3371_v8 = vld [vmem:[#allocation18_spill] sm:$0xff]  ;;  %v3372_v9 = vld [vmem:[#allocation19_spill] sm:$0xff] }
 0x32f   :  { %1012 = vmatprep.subr.mxu0 %v2233_v10  ;;  %1083 = vmatprep.subr.mxu1 %v2237_v11  ;;  %v3373_v10 = vld [vmem:[#allocation20_spill] sm:$0xff]  ;;  %v3374_v11 = vld [vmem:[#allocation21_spill] sm:$0xff] }
 0x330   :  { %1013 = vmatpush1.msra.mxu0 %v2239_v12  ;;  %1084 = vmatpush1.msra.mxu1 %v2241_v13  ;;  %v3375_v12 = vld [vmem:[#allocation22_spill] sm:$0xff]  ;;  %v3376_v13 = vld [vmem:[#allocation23_spill] sm:$0xff] }
 0x331   :  { %1014 = vmatprep.subr.mxu0 %v2245_v14  ;;  %1085 = vmatprep.subr.mxu1 %v2247_v15  ;;  %v3377_v14 = vld [vmem:[#allocation24_spill] sm:$0xff]  ;;  %v3378_v15 = vld [vmem:[#allocation25_spill] sm:$0xff] }
 0x332   :  { %1015 = vmatpush1.msra.mxu0 %v2251_v16  ;;  %1086 = vmatpush1.msra.mxu1 %v2253_v17  ;;  %v3379_v16 = vld [vmem:[#allocation26_spill] sm:$0xff]  ;;  %v3380_v17 = vld [vmem:[#allocation27_spill] sm:$0xff] }
 0x333   :  { %1016 = vmatprep.subr.mxu0 %v2257_v18  ;;  %1087 = vmatprep.subr.mxu1 %v2259_v19  ;;  %v3381_v18 = vld [vmem:[#allocation28_spill] sm:$0xff]  ;;  %v3382_v19 = vld [vmem:[#allocation29_spill] sm:$0xff] }
 0x334   :  { %1017 = vmatpush1.msra.mxu0 %v2263_v20  ;;  %1088 = vmatpush1.msra.mxu1 %v2265_v21  ;;  %v3383_v20 = vld [vmem:[#allocation30_spill] sm:$0xff]  ;;  %v3384_v21 = vld [vmem:[#allocation31_spill] sm:$0xff] }
 0x335   :  { %1018 = vmatprep.subr.mxu0 %v2269_v22  ;;  %1089 = vmatprep.subr.mxu1 %v2271_v23  ;;  %v3385_v22 = vld [vmem:[#allocation32_spill] sm:$0xff]  ;;  %v3386_v23 = vld [vmem:[#allocation33_spill] sm:$0xff] }
 0x336   :  { %1019 = vmatpush1.msra.mxu0 %v2275_v24  ;;  %1090 = vmatpush1.msra.mxu1 %v2277_v25  ;;  %v3387_v24 = vld [vmem:[#allocation34_spill] sm:$0xff]  ;;  %v3388_v25 = vmov 0.0  }
 0x337   :  { %1020 = vmatprep.subr.mxu0 %v2281_v26  ;;  %1091 = vmatprep.subr.mxu1 %v2283_v27  ;;  %v3389_v26 = vld [vmem:[#allocation35_spill] sm:$0xff]  ;;  %v2752_v27 = vld [vmem:[#allocation3 + $0x1e8] sm:$0xff] }
 0x338   :  { %1021 = vmatpush1.msra.mxu0 %v2287_v28  ;;  %1092 = vmatpush1.msra.mxu1 %v2289_v29  ;;  %3390 = vst [vmem:[#allocation12_spill] sm:$0xff] %v2752_v27  ;;  %v2755_v28 = vld [vmem:[#allocation3 + $0x1f8] sm:$0xff]  ;;  %v80_v29 = vpop.permute.xlu1 %79 }
 0x339   :  { %1022 = vmatprep.subr.mxu0 %v2293_v30  ;;  %1093 = vmatprep.subr.mxu1 %v2295_v31  ;;  %3391 = vst [vmem:[#allocation13_spill] sm:$0xff] %v2755_v28  ;;  %v3392_v30 = vld [vmem:[#allocation36_spill] sm:$0xff]  ;;  %v138_v0 = vmul.f32 %v2505_v53, %v80_v29  ;;  %v137_v56 = vmul.f32 %v2510_v45, %v80_v29 }
 0x33a   :  { %1023 = vmatpush1.msra.mxu0 %v2299_v32  ;;  %1094 = vmatpush1.msra.mxu1 %v2301_v33  ;;  %v135_v31 = vmul.f32 %v3392_v30, %v80_v29  ;;  %v3393_v32 = vld [vmem:[#allocation37_spill] sm:$0xff] }
 0x33b   :  { %1024 = vmatprep.subr.mxu0 %v2305_v34  ;;  %1095 = vmatprep.subr.mxu1 %v2307_v35  ;;  %v136_v33 = vmul.f32 %v3393_v32, %v80_v29  ;;  %v191_v55 = vadd.f32 %v3395_v60, %v138_v0  ;;  %v190_v54 = vadd.f32 %v2514_v52, %v137_v56  ;;  %v2824_v29 = vld [vmem:[#allocation3 + $0x148] sm:$0xff]  ;;  %v2869_v56 = vld [vmem:[#allocation3 + $0xf0] sm:$0xff] }
 0x33c   :  { %1025 = vmatpush1.msra.mxu0 %v2311_v36  ;;  %1096 = vmatpush1.msra.mxu1 %v2313_v37  ;;  %v188_v34 = vadd.f32 %v2498_v3, %v135_v31  ;;  %v3394_v37 = vld [vmem:[#allocation38_spill] sm:$0xff]  ;;  %v2860_v0 = vld [vmem:[#allocation3 + $0xe8] sm:$0xff] }
 0x33d   :  { %1026 = vmatprep.subr.mxu0 %v2317_v38  ;;  %1097 = vmatprep.subr.mxu1 %v2319_v39  ;;  %v189_v38 = vadd.f32 %v3394_v37, %v136_v33  ;;  %v2827_v31 = vld [vmem:[#allocation3 + $0x158] sm:$0xff]  ;;  %v2830_v33 = vld [vmem:[#allocation3 + $0x140] sm:$0xff] }
 0x33e   :  { %1027 = vmatpush1.msra.mxu0 %v2323_v40  ;;  %1098 = vmatpush1.msra.mxu1 %v2325_v41 }
 0x33f   :  { %1028 = vmatprep.subr.mxu0 %v2329_v42  ;;  %1099 = vmatprep.subr.mxu1 %v2331_v43 }
 0x340   :  { %1029 = vmatpush1.msra.mxu0 %v3367_v4  ;;  %1100 = vmatpush1.msra.mxu1 %v3368_v5 }
 0x341   :  { %1030 = vmatprep.subr.mxu0 %v3369_v6  ;;  %1101 = vmatprep.subr.mxu1 %v3370_v7 }
 0x342   :  { %1031 = vmatpush1.msra.mxu0 %v3371_v8  ;;  %1102 = vmatpush1.msra.mxu1 %v3372_v9  ;;  %v2770_v9 = vld [vmem:[#allocation3 + $0x1e0] sm:$0xff] }
 0x343   :  { %1032 = vmatprep.subr.mxu0 %v3373_v10  ;;  %1103 = vmatprep.subr.mxu1 %v3374_v11  ;;  %v2773_v10 = vld [vmem:[#allocation3 + $0x1f0] sm:$0xff]  ;;  %v2776_v11 = vld [vmem:[#allocation3 + $0x1c8] sm:$0xff] }
 0x344   :  { %1033 = vmatpush1.msra.mxu0 %v3375_v12  ;;  %1104 = vmatpush1.msra.mxu1 %v3376_v13  ;;  %v2782_v12 = vld [vmem:[#allocation3 + $0x1c0] sm:$0xff]  ;;  %v2785_v13 = vld [vmem:[#allocation3 + $0x1d0] sm:$0xff] }
 0x345   :  { %1034 = vmatprep.subr.mxu0 %v3377_v14  ;;  %1105 = vmatprep.subr.mxu1 %v3378_v15  ;;  %v2788_v14 = vld [vmem:[#allocation3 + $0x1a8] sm:$0xff]  ;;  %v2791_v15 = vld [vmem:[#allocation3 + $0x1b8] sm:$0xff] }
 0x346   :  { %1035 = vmatpush1.msra.mxu0 %v3379_v16  ;;  %1106 = vmatpush1.msra.mxu1 %v3380_v17  ;;  %v2794_v16 = vld [vmem:[#allocation3 + $0x1a0] sm:$0xff]  ;;  %v2797_v17 = vld [vmem:[#allocation3 + $0x1b0] sm:$0xff] }
 0x347   :  { %1036 = vmatprep.subr.mxu0 %v3381_v18  ;;  %1107 = vmatprep.subr.mxu1 %v3382_v19  ;;  %v2800_v18 = vld [vmem:[#allocation3 + $0x188] sm:$0xff]  ;;  %v2803_v19 = vld [vmem:[#allocation3 + $0x198] sm:$0xff] }
 0x348   :  { %1037 = vmatpush1.msra.mxu0 %v3383_v20  ;;  %1108 = vmatpush1.msra.mxu1 %v3384_v21  ;;  %v2806_v20 = vld [vmem:[#allocation3 + $0x180] sm:$0xff]  ;;  %v2809_v21 = vld [vmem:[#allocation3 + $0x190] sm:$0xff] }
 0x349   :  { %1038 = vmatprep.subr.mxu0 %v3385_v22  ;;  %1109 = vmatprep.subr.mxu1 %v3386_v23  ;;  %v2812_v22 = vld [vmem:[#allocation3 + $0x168] sm:$0xff]  ;;  %v2815_v23 = vld [vmem:[#allocation3 + $0x178] sm:$0xff] }
 0x34a   :  { %1039 = vmatpush1.msra.mxu0 %v3387_v24  ;;  %1072 = vmatprep.mubr.f32.mxu0 %v3388_v25  ;;  %v2818_v24 = vld [vmem:[#allocation3 + $0x160] sm:$0xff] }
 0x34b   :  { %1110 = vmatpush1.msra.mxu1 %v3389_v26  ;;  %1143 = vmatprep.mubr.f32.mxu1 %v3388_v25  ;;  %v2821_v26 = vld [vmem:[#allocation3 + $0x170] sm:$0xff] }
 0x34c   :  { %1183 = vmatprep.subr.mxu0 %v2752_v27  ;;  %1254 = vmatprep.subr.mxu1 %v2755_v28 }
 0x3eb   :  { %v899_v35 = vpop.f32.mrf.mxu0  ;;  %v970_v42 = vpop.f32.mrf.mxu1 }
 0x3ec   :  { %v975_v36 = vadd.f32 %v899_v35, %v188_v34  ;;  %v977_v46 = vadd.f32 %v970_v42, %v190_v54  ;;  %v2833_v34 = vld [vmem:[#allocation3 + $0x150] sm:$0xff]  ;;  %v2836_v35 = vld [vmem:[#allocation3 + $0x128] sm:$0xff]  ;;  %v2854_v42 = vld [vmem:[#allocation3 + $0x100] sm:$0xff] }
 0x3ed   :  { %v901_v39 = vpop.f32.mrf.mxu0  ;;  %v972_v62 = vpop.f32.mrf.mxu1  ;;  %v2875_v54 = vld [vmem:[#allocation3 + $0xd8] sm:$0xff] }
 0x3ee   :  { %v1822_v40 = vmul.f32 -1.442695, %v975_v36  ;;  %v976_v41 = vadd.f32 %v901_v39, %v189_v38  ;;  %v978_v63 = vadd.f32 %v972_v62, %v191_v55  ;;  %v2839_v36 = vld [vmem:[#allocation3 + $0x138] sm:$0xff]  ;;  %v2842_v38 = vld [vmem:[#allocation3 + $0x120] sm:$0xff]  ;;  %v2845_v39 = vld [vmem:[#allocation3 + $0x130] sm:$0xff] }
 0x3ef   :  { %v2863_v62 = vld [vmem:[#allocation3 + $0xf8] sm:$0xff]  ;;  %v2866_v55 = vld [vmem:[#allocation3 + $0xe0] sm:$0xff] }
 0x3f0   :  { %1950 = vpow2.f32 %v1822_v40  ;;  %v1823_v43 = vmul.f32 -1.442695, %v976_v41  ;;  %v1824_v1 = vmul.f32 -1.442695, %v978_v63  ;;  %v2848_v40 = vld [vmem:[#allocation3 + $0x108] sm:$0xff]  ;;  %v2851_v41 = vld [vmem:[#allocation3 + $0x118] sm:$0xff] }
 0x3f1   :  { %v2872_v63 = vld [vmem:[#allocation3 + $0xc8] sm:$0xff] }
 0x3f2   :  { %1952 = vpow2.f32 %v1823_v43  ;;  %v2857_v43 = vld [vmem:[#allocation3 + $0x110] sm:$0xff] }
 0x3f3   :  { %1954 = vpow2.f32 %v1824_v1  ;;  %v2878_v1 = vld [vmem:[#allocation3 + $0xc0] sm:$0xff] }
 0x3fd   :  { %v1951_v49 = vpop.eup %1950 }
 0x3fe   :  { %v982_v59 = vadd.f32 1.0, %v1951_v49  ;;  %v2881_v49 = vld [vmem:[#allocation3 + $0xd0] sm:$0xff] }
 0x3ff   :  { %v1953_v47 = vpop.eup %1952 }
 0x400   :  { %1956 = vrcp.f32 %v982_v59  ;;  %v988_v57 = vadd.f32 1.0, %v1953_v47  ;;  %v1955_v50 = vpop.eup %1954  ;;  %v2887_v59 = vld [vmem:[#allocation3 + $0xb8] sm:$0xff]  ;;  %v2890_v47 = vld [vmem:[#allocation3 + $0xa0] sm:$0xff] }
 0x401   :  { %1958 = vtanh.f32 %v977_v46  ;;  %v995_v58 = vadd.f32 1.0, %v1955_v50  ;;  %v2884_v46 = vld [vmem:[#allocation3 + $0xa8] sm:$0xff]  ;;  %3396 = vst [vmem:[#allocation14_spill] sm:$0xff] %v2890_v47 }
 0x402   :  { %1960 = vrcp.f32 %v988_v57  ;;  %v2893_v57 = vld [vmem:[#allocation3 + $0xb0] sm:$0xff]  ;;  %v2896_v50 = vld [vmem:[#allocation3 + $0x88] sm:$0xff] }
 0x403   :  { %1962 = vrcp.f32 %v995_v58  ;;  %3397 = vst [vmem:[#allocation15_spill] sm:$0xff] %v2893_v57  ;;  %3398 = vst [vmem:[#allocation16_spill] sm:$0xff] %v2896_v50  ;;  %v2908_v58 = vld [vmem:[#allocation3 + $0x68] sm:$0xff] }
 0x404   :  { %3402 = vst [vmem:[#allocation20_spill] sm:$0xff] %v2908_v58 }
 0x40d   :  { %v1957_v48 = vpop.eup %1956 }
 0x40e   :  { %v1959_v61 = vpop.eup %1958 }
 0x40f   :  { %v1961_v2 = vpop.eup %1960  ;;  %v999_v44 = vmul.f32 %v1959_v61, %v1957_v48  ;;  %v2899_v48 = vld [vmem:[#allocation3 + $0x98] sm:$0xff]  ;;  %v2902_v61 = vld [vmem:[#allocation3 + $0x80] sm:$0xff] }
 0x410   :  { %v998_v4 = vmul.f32 %v1961_v2, %v2685_v51  ;;  %v1963_v6 = vpop.eup %1962  ;;  %v2779_v51 = vld [vmem:[#allocation3 + $0x1d8] sm:$0xff]  ;;  %3399 = vst [vmem:[#allocation17_spill] sm:$0xff] %v2899_v48  ;;  %3400 = vst [vmem:[#allocation18_spill] sm:$0xff] %v2902_v61  ;;  %v2905_v2 = vld [vmem:[#allocation3 + $0x90] sm:$0xff] }
 0x411   :  { %3401 = vst [vmem:[#allocation19_spill] sm:$0xff] %v2905_v2 }
 0x412   :  { %v2767_v5 = vadd.f32 %v999_v44, %v998_v4  ;;  %v2911_v44 = vld [vmem:[#allocation3 + $0x78] sm:$0xff]  ;;  %v2914_v4 = vld [vmem:[#allocation3 + $0x60] sm:$0xff] }
 0x413   :  { %3403 = vst [vmem:[#allocation21_spill] sm:$0xff] %v2911_v44  ;;  %3404 = vst [vmem:[#allocation22_spill] sm:$0xff] %v2914_v4 }
 0x414   :  { %1964 = vtanh.f32 %v2767_v5 }
 0x421   :  { %v1965_v7 = vpop.eup %1964 }
 0x422   :  { %v1002_v8 = vmul.f32 %v1965_v7, %v1963_v6  ;;  %v2917_v6 = vld [vmem:[#allocation3 + $0x70] sm:$0xff]  ;;  %v2920_v7 = vld [vmem:[#allocation3 + $0x48] sm:$0xff] }
 0x423   :  { %3405 = vst [vmem:[#allocation23_spill] sm:$0xff] %v2917_v6  ;;  %3406 = vst [vmem:[#allocation24_spill] sm:$0xff] %v2920_v7 }
 0x424   :  { %1073 = vmatmul.mubr.f32.vlgmr.msra.gmra.mxu0 %v1002_v8  ;;  %1144 = vmatmul.mubr.f32.vlgmr.msra.gmra.mxu1 %v1002_v8  ;;  %v2923_v8 = vld [vmem:[#allocation3 + $0x58] sm:$0xff] }
 0x425   :  { %1184 = vmatpush1.msra.mxu0 %v2770_v9  ;;  %1255 = vmatpush1.msra.mxu1 %v2773_v10  ;;  %3407 = vst [vmem:[#allocation25_spill] sm:$0xff] %v2923_v8 }
 0x426   :  { %1185 = vmatprep.subr.mxu0 %v2776_v11  ;;  %1256 = vmatprep.subr.mxu1 %v2779_v51 }
 0x427   :  { %1186 = vmatpush1.msra.mxu0 %v2782_v12  ;;  %1257 = vmatpush1.msra.mxu1 %v2785_v13 }
 0x428   :  { %1187 = vmatprep.subr.mxu0 %v2788_v14  ;;  %1258 = vmatprep.subr.mxu1 %v2791_v15 }
 0x429   :  { %1188 = vmatpush1.msra.mxu0 %v2794_v16  ;;  %1259 = vmatpush1.msra.mxu1 %v2797_v17 }
 0x42a   :  { %1189 = vmatprep.subr.mxu0 %v2800_v18  ;;  %1260 = vmatprep.subr.mxu1 %v2803_v19 }
 0x42b   :  { %1190 = vmatpush1.msra.mxu0 %v2806_v20  ;;  %1261 = vmatpush1.msra.mxu1 %v2809_v21 }
 0x42c   :  { %1191 = vmatprep.subr.mxu0 %v2812_v22  ;;  %1262 = vmatprep.subr.mxu1 %v2815_v23 }
 0x42d   :  { %1192 = vmatpush1.msra.mxu0 %v2818_v24  ;;  %1263 = vmatpush1.msra.mxu1 %v2821_v26 }
 0x42e   :  { %1193 = vmatprep.subr.mxu0 %v2824_v29  ;;  %1264 = vmatprep.subr.mxu1 %v2827_v31 }
 0x42f   :  { %1194 = vmatpush1.msra.mxu0 %v2830_v33  ;;  %1265 = vmatpush1.msra.mxu1 %v2833_v34 }
 0x430   :  { %1195 = vmatprep.subr.mxu0 %v2836_v35  ;;  %1266 = vmatprep.subr.mxu1 %v2839_v36 }
 0x431   :  { %1196 = vmatpush1.msra.mxu0 %v2842_v38  ;;  %1267 = vmatpush1.msra.mxu1 %v2845_v39 }
 0x432   :  { %1197 = vmatprep.subr.mxu0 %v2848_v40  ;;  %1268 = vmatprep.subr.mxu1 %v2851_v41 }
 0x433   :  { %1198 = vmatpush1.msra.mxu0 %v2854_v42  ;;  %1269 = vmatpush1.msra.mxu1 %v2857_v43 }
 0x434   :  { %1199 = vmatprep.subr.mxu0 %v2860_v0  ;;  %1270 = vmatprep.subr.mxu1 %v2863_v62 }
 0x435   :  { %1200 = vmatpush1.msra.mxu0 %v2866_v55  ;;  %1271 = vmatpush1.msra.mxu1 %v2869_v56 }
 0x436   :  { %1201 = vmatprep.subr.mxu0 %v2872_v63  ;;  %1272 = vmatprep.subr.mxu1 %v2875_v54 }
 0x437   :  { %1202 = vmatpush1.msra.mxu0 %v2878_v1  ;;  %1273 = vmatpush1.msra.mxu1 %v2881_v49 }
 0x438   :  { %1203 = vmatprep.subr.mxu0 %v2884_v46  ;;  %1274 = vmatprep.subr.mxu1 %v2887_v59 }
 0x439   :  { %1204 = vmatpush1.msra.mxu0 %v2890_v47  ;;  %1275 = vmatpush1.msra.mxu1 %v2893_v57 }
 0x43a   :  { %1205 = vmatprep.subr.mxu0 %v2896_v50  ;;  %1276 = vmatprep.subr.mxu1 %v2899_v48 }
 0x43b   :  { %1206 = vmatpush1.msra.mxu0 %v2902_v61  ;;  %1277 = vmatpush1.msra.mxu1 %v2905_v2 }
 0x43c   :  { %1207 = vmatprep.subr.mxu0 %v2908_v58  ;;  %1278 = vmatprep.subr.mxu1 %v2911_v44  ;;  %v2926_v58 = vld [vmem:[#allocation3 + $0x40] sm:$0xff]  ;;  %v2929_v44 = vld [vmem:[#allocation3 + $0x50] sm:$0xff] }
 0x43d   :  { %1208 = vmatpush1.msra.mxu0 %v2914_v4  ;;  %1279 = vmatpush1.msra.mxu1 %v2917_v6  ;;  %3408 = vst [vmem:[#allocation26_spill] sm:$0xff] %v2926_v58  ;;  %3409 = vst [vmem:[#allocation27_spill] sm:$0xff] %v2929_v44  ;;  %v2932_v4 = vld [vmem:[#allocation3 + $0x28] sm:$0xff]  ;;  %v2935_v6 = vld [vmem:[#allocation3 + $0x38] sm:$0xff] }
 0x43e   :  { %1209 = vmatprep.subr.mxu0 %v2920_v7  ;;  %1280 = vmatprep.subr.mxu1 %v2923_v8  ;;  %3410 = vst [vmem:[#allocation28_spill] sm:$0xff] %v2932_v4  ;;  %3411 = vst [vmem:[#allocation29_spill] sm:$0xff] %v2935_v6  ;;  %v2938_v7 = vld [vmem:[#allocation3 + $0x20] sm:$0xff]  ;;  %v2941_v8 = vld [vmem:[#allocation3 + $0x30] sm:$0xff] }
 0x43f   :  { %1210 = vmatpush1.msra.mxu0 %v2926_v58  ;;  %1281 = vmatpush1.msra.mxu1 %v2929_v44  ;;  %3412 = vst [vmem:[#allocation30_spill] sm:$0xff] %v2938_v7  ;;  %3413 = vst [vmem:[#allocation31_spill] sm:$0xff] %v2941_v8  ;;  %v2944_v58 = vld [vmem:[#allocation3 + $0x8] sm:$0xff]  ;;  %v2947_v44 = vld [vmem:[#allocation3 + $0x18] sm:$0xff] }
 0x440   :  { %1211 = vmatprep.subr.mxu0 %v2932_v4  ;;  %1282 = vmatprep.subr.mxu1 %v2935_v6  ;;  %3414 = vst [vmem:[#allocation32_spill] sm:$0xff] %v2944_v58  ;;  %3415 = vst [vmem:[#allocation33_spill] sm:$0xff] %v2947_v44  ;;  %v2950_v4 = vld [vmem:[#allocation3] sm:$0xff]  ;;  %v2954_v6 = vld [vmem:[#allocation3 + $0x10] sm:$0xff] }
 0x441   :  { %1212 = vmatpush1.msra.mxu0 %v2938_v7  ;;  %1283 = vmatpush1.msra.mxu1 %v2941_v8  ;;  %3416 = vst [vmem:[#allocation34_spill] sm:$0xff] %v2950_v4  ;;  %3417 = vst [vmem:[#allocation35_spill] sm:$0xff] %v2954_v6 }
 0x442   :  { %1213 = vmatprep.subr.mxu0 %v2944_v58  ;;  %1284 = vmatprep.subr.mxu1 %v2947_v44  ;;  %v85_v58 = vpop.permute.xlu0 %84 }
 0x443   :  { %1214 = vmatpush1.msra.mxu0 %v2950_v4  ;;  %1247 = vmatprep.mubr.f32.mxu0 %v3388_v25  ;;  %v139_v8 = vmul.f32 %v3392_v30, %v85_v58  ;;  %v140_v44 = vmul.f32 %v3393_v32, %v85_v58  ;;  %v141_v32 = vmul.f32 %v2510_v45, %v85_v58 }
 0x444   :  { %1285 = vmatpush1.msra.mxu1 %v2954_v6  ;;  %1318 = vmatprep.mubr.f32.mxu1 %v3388_v25 }
 0x445   :  { %1358 = vmatprep.subr.mxu0 %v2752_v27  ;;  %1429 = vmatprep.subr.mxu1 %v2755_v28  ;;  %v192_v7 = vadd.f32 %v2498_v3, %v139_v8  ;;  %v193_v61 = vadd.f32 %v3394_v37, %v140_v44  ;;  %v142_v27 = vmul.f32 %v2505_v53, %v85_v58  ;;  %v3421_v58 = vld [vmem:[#allocation17_spill] sm:$0xff] }
 0x446   :  { %v194_v8 = vadd.f32 %v2514_v52, %v141_v32 }
 0x447   :  { %v195_v30 = vadd.f32 %v3395_v60, %v142_v27 }
 0x4e4   :  { %v1074_v4 = vpop.f32.mrf.mxu0  ;;  %v1145_v25 = vpop.f32.mrf.mxu1 }
 0x4e5   :  { %v1150_v2 = vadd.f32 %v1074_v4, %v192_v7  ;;  %v1152_v44 = vadd.f32 %v1145_v25, %v194_v8  ;;  %v3422_v8 = vld [vmem:[#allocation18_spill] sm:$0xff] }
 0x4e6   :  { %v1076_v48 = vpop.f32.mrf.mxu0  ;;  %v1147_v28 = vpop.f32.mrf.mxu1 }
 0x4e7   :  { %v1825_v50 = vmul.f32 -1.442695, %v1150_v2  ;;  %v1151_v6 = vadd.f32 %v1076_v48, %v193_v61  ;;  %v1153_v47 = vadd.f32 %v1147_v28, %v195_v30 }
 0x4e9   :  { %1966 = vpow2.f32 %v1825_v50  ;;  %v1826_v57 = vmul.f32 -1.442695, %v1151_v6  ;;  %v1827_v4 = vmul.f32 -1.442695, %v1153_v47 }
 0x4eb   :  { %1968 = vpow2.f32 %v1826_v57 }
 0x4ec   :  { %1970 = vpow2.f32 %v1827_v4  ;;  %v3423_v4 = vld [vmem:[#allocation19_spill] sm:$0xff] }
 0x4f6   :  { %v1967_v7 = vpop.eup %1966 }
 0x4f7   :  { %v1157_v37 = vadd.f32 1.0, %v1967_v7  ;;  %v3424_v7 = vld [vmem:[#allocation20_spill] sm:$0xff] }
 0x4f8   :  { %v1969_v2 = vpop.eup %1968 }
 0x4f9   :  { %1972 = vrcp.f32 %v1157_v37  ;;  %v1163_v50 = vadd.f32 1.0, %v1969_v2  ;;  %v1971_v48 = vpop.eup %1970  ;;  %v3418_v37 = vld [vmem:[#allocation14_spill] sm:$0xff] }
 0x4fa   :  { %1974 = vtanh.f32 %v1152_v44  ;;  %v1170_v27 = vadd.f32 1.0, %v1971_v48  ;;  %v3425_v44 = vld [vmem:[#allocation21_spill] sm:$0xff]  ;;  %v3426_v2 = vld [vmem:[#allocation22_spill] sm:$0xff]  ;;  %v3428_v48 = vld [vmem:[#allocation24_spill] sm:$0xff] }
 0x4fb   :  { %1976 = vrcp.f32 %v1163_v50  ;;  %v3427_v50 = vld [vmem:[#allocation23_spill] sm:$0xff] }
 0x4fc   :  { %1978 = vrcp.f32 %v1170_v27  ;;  %v3432_v27 = vld [vmem:[#allocation28_spill] sm:$0xff] }
 0x506   :  { %v1973_v57 = vpop.eup %1972 }
 0x507   :  { %v1975_v61 = vpop.eup %1974 }
 0x508   :  { %v1977_v6 = vpop.eup %1976  ;;  %v1174_v60 = vmul.f32 %v1975_v61, %v1973_v57  ;;  %v3429_v57 = vld [vmem:[#allocation25_spill] sm:$0xff]  ;;  %v3430_v61 = vld [vmem:[#allocation26_spill] sm:$0xff] }
 0x509   :  { %v1173_v28 = vmul.f32 %v1977_v6, %v2767_v5  ;;  %v1979_v25 = vpop.eup %1978  ;;  %v3420_v5 = vld [vmem:[#allocation16_spill] sm:$0xff]  ;;  %v3431_v6 = vld [vmem:[#allocation27_spill] sm:$0xff] }
 0x50b   :  { %v2969_v30 = vadd.f32 %v1174_v60, %v1173_v28  ;;  %v3419_v60 = vld [vmem:[#allocation15_spill] sm:$0xff]  ;;  %v3433_v28 = vld [vmem:[#allocation29_spill] sm:$0xff] }
 0x50d   :  { %1980 = vtanh.f32 %v2969_v30 }
 0x51a   :  { %v1981_v32 = vpop.eup %1980 }
 0x51b   :  { %v1177_v47 = vmul.f32 %v1981_v32, %v1979_v25  ;;  %v3434_v25 = vld [vmem:[#allocation30_spill] sm:$0xff]  ;;  %v3435_v32 = vld [vmem:[#allocation31_spill] sm:$0xff] }
 0x51d   :  { %1248 = vmatmul.mubr.f32.vlgmr.msra.gmra.mxu0 %v1177_v47  ;;  %1319 = vmatmul.mubr.f32.vlgmr.msra.gmra.mxu1 %v1177_v47  ;;  %v3436_v47 = vld [vmem:[#allocation32_spill] sm:$0xff] }
 0x51e   :  { %1359 = vmatpush1.msra.mxu0 %v2770_v9  ;;  %1430 = vmatpush1.msra.mxu1 %v2773_v10 }
 0x51f   :  { %1360 = vmatprep.subr.mxu0 %v2776_v11  ;;  %1431 = vmatprep.subr.mxu1 %v2779_v51 }
 0x520   :  { %1361 = vmatpush1.msra.mxu0 %v2782_v12  ;;  %1432 = vmatpush1.msra.mxu1 %v2785_v13 }
 0x521   :  { %1362 = vmatprep.subr.mxu0 %v2788_v14  ;;  %1433 = vmatprep.subr.mxu1 %v2791_v15 }
 0x522   :  { %1363 = vmatpush1.msra.mxu0 %v2794_v16  ;;  %1434 = vmatpush1.msra.mxu1 %v2797_v17 }
 0x523   :  { %1364 = vmatprep.subr.mxu0 %v2800_v18  ;;  %1435 = vmatprep.subr.mxu1 %v2803_v19 }
 0x524   :  { %1365 = vmatpush1.msra.mxu0 %v2806_v20  ;;  %1436 = vmatpush1.msra.mxu1 %v2809_v21 }
 0x525   :  { %1366 = vmatprep.subr.mxu0 %v2812_v22  ;;  %1437 = vmatprep.subr.mxu1 %v2815_v23 }
 0x526   :  { %1367 = vmatpush1.msra.mxu0 %v2818_v24  ;;  %1438 = vmatpush1.msra.mxu1 %v2821_v26 }
 0x527   :  { %1368 = vmatprep.subr.mxu0 %v2824_v29  ;;  %1439 = vmatprep.subr.mxu1 %v2827_v31 }
 0x528   :  { %1369 = vmatpush1.msra.mxu0 %v2830_v33  ;;  %1440 = vmatpush1.msra.mxu1 %v2833_v34 }
 0x529   :  { %1370 = vmatprep.subr.mxu0 %v2836_v35  ;;  %1441 = vmatprep.subr.mxu1 %v2839_v36 }
 0x52a   :  { %1371 = vmatpush1.msra.mxu0 %v2842_v38  ;;  %1442 = vmatpush1.msra.mxu1 %v2845_v39 }
 0x52b   :  { %1372 = vmatprep.subr.mxu0 %v2848_v40  ;;  %1443 = vmatprep.subr.mxu1 %v2851_v41 }
 0x52c   :  { %1373 = vmatpush1.msra.mxu0 %v2854_v42  ;;  %1444 = vmatpush1.msra.mxu1 %v2857_v43 }
 0x52d   :  { %1374 = vmatprep.subr.mxu0 %v2860_v0  ;;  %1445 = vmatprep.subr.mxu1 %v2863_v62 }
 0x52e   :  { %1375 = vmatpush1.msra.mxu0 %v2866_v55  ;;  %1446 = vmatpush1.msra.mxu1 %v2869_v56 }
 0x52f   :  { %1376 = vmatprep.subr.mxu0 %v2872_v63  ;;  %1447 = vmatprep.subr.mxu1 %v2875_v54 }
 0x530   :  { %1377 = vmatpush1.msra.mxu0 %v2878_v1  ;;  %1448 = vmatpush1.msra.mxu1 %v2881_v49 }
 0x531   :  { %1378 = vmatprep.subr.mxu0 %v2884_v46  ;;  %1449 = vmatprep.subr.mxu1 %v2887_v59 }
 0x532   :  { %1379 = vmatpush1.msra.mxu0 %v3418_v37  ;;  %1450 = vmatpush1.msra.mxu1 %v3419_v60  ;;  %v3446_v60 = vld [vmem:[#allocation39_spill] sm:$0xff] }
 0x533   :  { %1380 = vmatprep.subr.mxu0 %v3420_v5  ;;  %1451 = vmatprep.subr.mxu1 %v3421_v58 }
 0x534   :  { %1381 = vmatpush1.msra.mxu0 %v3422_v8  ;;  %1452 = vmatpush1.msra.mxu1 %v3423_v4 }
 0x535   :  { %1382 = vmatprep.subr.mxu0 %v3424_v7  ;;  %1453 = vmatprep.subr.mxu1 %v3425_v44 }
 0x536   :  { %1383 = vmatpush1.msra.mxu0 %v3426_v2  ;;  %1454 = vmatpush1.msra.mxu1 %v3427_v50  ;;  %v3437_v2 = vld [vmem:[#allocation33_spill] sm:$0xff]  ;;  %v3438_v50 = vld [vmem:[#allocation34_spill] sm:$0xff] }
 0x537   :  { %1384 = vmatprep.subr.mxu0 %v3428_v48  ;;  %1455 = vmatprep.subr.mxu1 %v3429_v57  ;;  %v3439_v48 = vmov 0.0   ;;  %v3440_v57 = vld [vmem:[#allocation35_spill] sm:$0xff] }
 0x538   :  { %1385 = vmatpush1.msra.mxu0 %v3430_v61  ;;  %1456 = vmatpush1.msra.mxu1 %v3431_v6  ;;  %v3441_v6 = vld [vmem:[#allocation12_spill] sm:$0xff] }
 0x539   :  { %1386 = vmatprep.subr.mxu0 %v3432_v27  ;;  %1457 = vmatprep.subr.mxu1 %v3433_v28  ;;  %v3442_v27 = vld [vmem:[#allocation13_spill] sm:$0xff]  ;;  %v90_v28 = vpop.permute.xlu1 %89 }
 0x53a   :  { %1387 = vmatpush1.msra.mxu0 %v3434_v25  ;;  %1458 = vmatpush1.msra.mxu1 %v3435_v32  ;;  %v3443_v25 = vld [vmem:[#allocation36_spill] sm:$0xff]  ;;  %v3444_v32 = vld [vmem:[#allocation37_spill] sm:$0xff] }
 0x53b   :  { %1388 = vmatprep.subr.mxu0 %v3436_v47  ;;  %1459 = vmatprep.subr.mxu1 %v3437_v2  ;;  %v143_v61 = vmul.f32 %v3443_v25, %v90_v28  ;;  %v144_v44 = vmul.f32 %v3444_v32, %v90_v28  ;;  %v145_v32 = vmul.f32 %v2510_v45, %v90_v28 }
 0x53c   :  { %1389 = vmatpush1.msra.mxu0 %v3438_v50  ;;  %1422 = vmatprep.mubr.f32.mxu0 %v3439_v48  ;;  %v3445_v50 = vld [vmem:[#allocation38_spill] sm:$0xff] }
 0x53d   :  { %1460 = vmatpush1.msra.mxu1 %v3440_v57  ;;  %1493 = vmatprep.mubr.f32.mxu1 %v3439_v48  ;;  %v196_v47 = vadd.f32 %v2498_v3, %v143_v61  ;;  %v197_v4 = vadd.f32 %v3445_v50, %v144_v44  ;;  %v198_v61 = vadd.f32 %v2514_v52, %v145_v32 }
 0x53e   :  { %1533 = vmatprep.subr.mxu0 %v3441_v6  ;;  %1604 = vmatprep.subr.mxu1 %v3442_v27  ;;  %v146_v6 = vmul.f32 %v2505_v53, %v90_v28 }
 0x540   :  { %v199_v25 = vadd.f32 %v3446_v60, %v146_v6 }
 0x5dd   :  { %v1249_v2 = vpop.f32.mrf.mxu0  ;;  %v1320_v48 = vpop.f32.mrf.mxu1 }
 0x5de   :  { %v1325_v7 = vadd.f32 %v1249_v2, %v196_v47  ;;  %v1327_v44 = vadd.f32 %v1320_v48, %v198_v61 }
 0x5df   :  { %v1251_v8 = vpop.f32.mrf.mxu0  ;;  %v1322_v27 = vpop.f32.mrf.mxu1 }
 0x5e0   :  { %v1828_v58 = vmul.f32 -1.442695, %v1325_v7  ;;  %v1326_v57 = vadd.f32 %v1251_v8, %v197_v4  ;;  %v1328_v37 = vadd.f32 %v1322_v27, %v199_v25 }
 0x5e2   :  { %1982 = vpow2.f32 %v1828_v58  ;;  %v1829_v5 = vmul.f32 -1.442695, %v1326_v57  ;;  %v1830_v2 = vmul.f32 -1.442695, %v1328_v37 }
 0x5e4   :  { %1984 = vpow2.f32 %v1829_v5 }
 0x5e5   :  { %1986 = vpow2.f32 %v1830_v2 }
 0x5ef   :  { %v1983_v47 = vpop.eup %1982 }
 0x5f0   :  { %v1332_v50 = vadd.f32 1.0, %v1983_v47 }
 0x5f1   :  { %v1985_v7 = vpop.eup %1984 }
 0x5f2   :  { %1988 = vrcp.f32 %v1332_v50  ;;  %v1338_v58 = vadd.f32 1.0, %v1985_v7  ;;  %v1987_v8 = vpop.eup %1986 }
 0x5f3   :  { %1990 = vtanh.f32 %v1327_v44  ;;  %v1345_v6 = vadd.f32 1.0, %v1987_v8 }
 0x5f4   :  { %1992 = vrcp.f32 %v1338_v58 }
 0x5f5   :  { %1994 = vrcp.f32 %v1345_v6 }
 0x5ff   :  { %v1989_v5 = vpop.eup %1988 }
 0x600   :  { %v1991_v4 = vpop.eup %1990 }
 0x601   :  { %v1993_v57 = vpop.eup %1992  ;;  %v1349_v60 = vmul.f32 %v1991_v4, %v1989_v5 }
 0x602   :  { %v1348_v28 = vmul.f32 %v1993_v57, %v2969_v30  ;;  %v1995_v37 = vpop.eup %1994  ;;  %v3473_v30 = vld [vmem:[#allocation39_spill] sm:$0xff] }
 0x604   :  { %v3047_v25 = vadd.f32 %v1349_v60, %v1348_v28 }
 0x606   :  { %1996 = vtanh.f32 %v3047_v25 }
 0x613   :  { %v1997_v48 = vpop.eup %1996 }
 0x614   :  { %v1352_v32 = vmul.f32 %v1997_v48, %v1995_v37 }
 0x616   :  { %1423 = vmatmul.mubr.f32.vlgmr.msra.gmra.mxu0 %v1352_v32  ;;  %1494 = vmatmul.mubr.f32.vlgmr.msra.gmra.mxu1 %v1352_v32 }
 0x617   :  { %1534 = vmatpush1.msra.mxu0 %v2770_v9  ;;  %1605 = vmatpush1.msra.mxu1 %v2773_v10  ;;  %v3447_v9 = vld [vmem:[#allocation14_spill] sm:$0xff]  ;;  %v3448_v10 = vld [vmem:[#allocation15_spill] sm:$0xff] }
 0x618   :  { %1535 = vmatprep.subr.mxu0 %v2776_v11  ;;  %1606 = vmatprep.subr.mxu1 %v2779_v51  ;;  %v3449_v11 = vld [vmem:[#allocation16_spill] sm:$0xff]  ;;  %v3450_v51 = vld [vmem:[#allocation17_spill] sm:$0xff] }
 0x619   :  { %1536 = vmatpush1.msra.mxu0 %v2782_v12  ;;  %1607 = vmatpush1.msra.mxu1 %v2785_v13  ;;  %v3451_v12 = vld [vmem:[#allocation18_spill] sm:$0xff]  ;;  %v3452_v13 = vld [vmem:[#allocation19_spill] sm:$0xff] }
 0x61a   :  { %1537 = vmatprep.subr.mxu0 %v2788_v14  ;;  %1608 = vmatprep.subr.mxu1 %v2791_v15  ;;  %v3453_v14 = vld [vmem:[#allocation20_spill] sm:$0xff]  ;;  %v3454_v15 = vld [vmem:[#allocation21_spill] sm:$0xff] }
 0x61b   :  { %1538 = vmatpush1.msra.mxu0 %v2794_v16  ;;  %1609 = vmatpush1.msra.mxu1 %v2797_v17  ;;  %v3455_v16 = vld [vmem:[#allocation22_spill] sm:$0xff]  ;;  %v3456_v17 = vld [vmem:[#allocation23_spill] sm:$0xff] }
 0x61c   :  { %1539 = vmatprep.subr.mxu0 %v2800_v18  ;;  %1610 = vmatprep.subr.mxu1 %v2803_v19  ;;  %v3457_v18 = vld [vmem:[#allocation24_spill] sm:$0xff]  ;;  %v3458_v19 = vld [vmem:[#allocation25_spill] sm:$0xff] }
 0x61d   :  { %1540 = vmatpush1.msra.mxu0 %v2806_v20  ;;  %1611 = vmatpush1.msra.mxu1 %v2809_v21  ;;  %v3459_v20 = vld [vmem:[#allocation26_spill] sm:$0xff]  ;;  %v3460_v21 = vld [vmem:[#allocation27_spill] sm:$0xff] }
 0x61e   :  { %1541 = vmatprep.subr.mxu0 %v2812_v22  ;;  %1612 = vmatprep.subr.mxu1 %v2815_v23  ;;  %v3461_v22 = vld [vmem:[#allocation28_spill] sm:$0xff]  ;;  %v3462_v23 = vld [vmem:[#allocation29_spill] sm:$0xff] }
 0x61f   :  { %1542 = vmatpush1.msra.mxu0 %v2818_v24  ;;  %1613 = vmatpush1.msra.mxu1 %v2821_v26  ;;  %v3463_v24 = vld [vmem:[#allocation30_spill] sm:$0xff]  ;;  %v3464_v26 = vld [vmem:[#allocation31_spill] sm:$0xff] }
 0x620   :  { %1543 = vmatprep.subr.mxu0 %v2824_v29  ;;  %1614 = vmatprep.subr.mxu1 %v2827_v31  ;;  %v3465_v29 = vld [vmem:[#allocation32_spill] sm:$0xff]  ;;  %v3466_v31 = vld [vmem:[#allocation33_spill] sm:$0xff] }
 0x621   :  { %1544 = vmatpush1.msra.mxu0 %v2830_v33  ;;  %1615 = vmatpush1.msra.mxu1 %v2833_v34  ;;  %v3467_v33 = vld [vmem:[#allocation34_spill] sm:$0xff]  ;;  %v3468_v34 = vmov 0.0  }
 0x622   :  { %1545 = vmatprep.subr.mxu0 %v2836_v35  ;;  %1616 = vmatprep.subr.mxu1 %v2839_v36  ;;  %v3469_v35 = vld [vmem:[#allocation35_spill] sm:$0xff]  ;;  %v95_v36 = vpop.permute.xlu0 %94 }
 0x623   :  { %1546 = vmatpush1.msra.mxu0 %v2842_v38  ;;  %1617 = vmatpush1.msra.mxu1 %v2845_v39  ;;  %v3470_v38 = vld [vmem:[#allocation36_spill] sm:$0xff]  ;;  %v149_v50 = vmul.f32 %v2510_v45, %v95_v36 }
 0x624   :  { %1547 = vmatprep.subr.mxu0 %v2848_v40  ;;  %1618 = vmatprep.subr.mxu1 %v2851_v41  ;;  %v147_v39 = vmul.f32 %v3470_v38, %v95_v36  ;;  %v3471_v40 = vld [vmem:[#allocation37_spill] sm:$0xff] }
 0x625   :  { %1548 = vmatpush1.msra.mxu0 %v2854_v42  ;;  %1619 = vmatpush1.msra.mxu1 %v2857_v43  ;;  %v148_v41 = vmul.f32 %v3471_v40, %v95_v36  ;;  %v202_v61 = vadd.f32 %v2514_v52, %v149_v50 }
 0x626   :  { %1549 = vmatprep.subr.mxu0 %v2860_v0  ;;  %1620 = vmatprep.subr.mxu1 %v2863_v62  ;;  %v200_v42 = vadd.f32 %v2498_v3, %v147_v39  ;;  %v3472_v62 = vld [vmem:[#allocation38_spill] sm:$0xff] }
 0x627   :  { %1550 = vmatpush1.msra.mxu0 %v2866_v55  ;;  %1621 = vmatpush1.msra.mxu1 %v2869_v56  ;;  %v201_v55 = vadd.f32 %v3472_v62, %v148_v41 }
 0x628   :  { %1551 = vmatprep.subr.mxu0 %v2872_v63  ;;  %1622 = vmatprep.subr.mxu1 %v2875_v54 }
 0x629   :  { %1552 = vmatpush1.msra.mxu0 %v2878_v1  ;;  %1623 = vmatpush1.msra.mxu1 %v2881_v49 }
 0x62a   :  { %1553 = vmatprep.subr.mxu0 %v2884_v46  ;;  %1624 = vmatprep.subr.mxu1 %v2887_v59  ;;  %v150_v46 = vmul.f32 %v2505_v53, %v95_v36 }
 0x62b   :  { %1554 = vmatpush1.msra.mxu0 %v3447_v9  ;;  %1625 = vmatpush1.msra.mxu1 %v3448_v10 }
 0x62c   :  { %1555 = vmatprep.subr.mxu0 %v3449_v11  ;;  %1626 = vmatprep.subr.mxu1 %v3450_v51  ;;  %v203_v60 = vadd.f32 %v3473_v30, %v150_v46  ;;  %v1718_v51 = vld [vmem:[#allocation6 + $0x78] sm:$0xff] }
 0x62d   :  { %1556 = vmatpush1.msra.mxu0 %v3451_v12  ;;  %1627 = vmatpush1.msra.mxu1 %v3452_v13  ;;  %v1717_v12 = vld [vmem:[#allocation6 + $0x70] sm:$0xff]  ;;  %v1716_v13 = vld [vmem:[#allocation6 + $0x68] sm:$0xff] }
 0x62e   :  { %1557 = vmatprep.subr.mxu0 %v3453_v14  ;;  %1628 = vmatprep.subr.mxu1 %v3454_v15  ;;  %v1714_v14 = vld [vmem:[#allocation6 + $0x58] sm:$0xff]  ;;  %v1713_v15 = vld [vmem:[#allocation6 + $0x50] sm:$0xff] }
 0x62f   :  { %1558 = vmatpush1.msra.mxu0 %v3455_v16  ;;  %1629 = vmatpush1.msra.mxu1 %v3456_v17  ;;  %v1712_v16 = vld [vmem:[#allocation6 + $0x48] sm:$0xff]  ;;  %v1711_v17 = vld [vmem:[#allocation6 + $0x40] sm:$0xff] }
 0x630   :  { %1559 = vmatprep.subr.mxu0 %v3457_v18  ;;  %1630 = vmatprep.subr.mxu1 %v3458_v19  ;;  %v1710_v18 = vld [vmem:[#allocation6 + $0x38] sm:$0xff]  ;;  %v1709_v19 = vld [vmem:[#allocation6 + $0x30] sm:$0xff] }
 0x631   :  { %1560 = vmatpush1.msra.mxu0 %v3459_v20  ;;  %1631 = vmatpush1.msra.mxu1 %v3460_v21  ;;  %v1708_v20 = vld [vmem:[#allocation6 + $0x28] sm:$0xff]  ;;  %v1707_v21 = vld [vmem:[#allocation6 + $0x20] sm:$0xff] }
 0x632   :  { %1561 = vmatprep.subr.mxu0 %v3461_v22  ;;  %1632 = vmatprep.subr.mxu1 %v3462_v23  ;;  %v1706_v22 = vld [vmem:[#allocation6 + $0x18] sm:$0xff]  ;;  %v1705_v23 = vld [vmem:[#allocation6 + $0x10] sm:$0xff] }
 0x633   :  { %1562 = vmatpush1.msra.mxu0 %v3463_v24  ;;  %1633 = vmatpush1.msra.mxu1 %v3464_v26  ;;  %v1704_v24 = vld [vmem:[#allocation6 + $0x8] sm:$0xff]  ;;  %v1703_v26 = vld [vmem:[#allocation6] sm:$0xff] }
 0x634   :  { %1563 = vmatprep.subr.mxu0 %v3465_v29  ;;  %1634 = vmatprep.subr.mxu1 %v3466_v31  ;;  %v100_v29 = vpop.permute.xlu1 %99 }
 0x635   :  { %1564 = vmatpush1.msra.mxu0 %v3467_v33  ;;  %1597 = vmatprep.mubr.f32.mxu0 %v3468_v34  ;;  %v151_v31 = vmul.f32 %v3470_v38, %v100_v29  ;;  %v152_v33 = vmul.f32 %v3471_v40, %v100_v29  ;;  %v153_v40 = vmul.f32 %v2510_v45, %v100_v29 }
 0x636   :  { %1635 = vmatpush1.msra.mxu1 %v3469_v35  ;;  %1668 = vmatprep.mubr.f32.mxu1 %v3468_v34 }
 0x637   :  { %1855 = vmatprep.subr.mxu0 %v3468_v34  ;;  %v204_v35 = vadd.f32 %v2498_v3, %v151_v31  ;;  %v205_v41 = vadd.f32 %v3472_v62, %v152_v33  ;;  %v206_v3 = vadd.f32 %v2514_v52, %v153_v40 }
 0x6d6   :  { %v1424_v43 = vpop.f32.mrf.mxu0  ;;  %v1495_v1 = vpop.f32.mrf.mxu1 }
 0x6d7   :  { %v1500_v0 = vadd.f32 %v1424_v43, %v200_v42  ;;  %v1502_v44 = vadd.f32 %v1495_v1, %v202_v61 }
 0x6d8   :  { %v1426_v56 = vpop.f32.mrf.mxu0  ;;  %v1497_v59 = vpop.f32.mrf.mxu1 }
 0x6d9   :  { %v1831_v63 = vmul.f32 -1.442695, %v1500_v0  ;;  %v1501_v54 = vadd.f32 %v1426_v56, %v201_v55  ;;  %v1503_v27 = vadd.f32 %v1497_v59, %v203_v60 }
 0x6db   :  { %1998 = vpow2.f32 %v1831_v63  ;;  %v1832_v49 = vmul.f32 -1.442695, %v1501_v54  ;;  %v1833_v2 = vmul.f32 -1.442695, %v1503_v27 }
 0x6dd   :  { %2000 = vpow2.f32 %v1832_v49 }
 0x6de   :  { %2002 = vpow2.f32 %v1833_v2 }
 0x6e8   :  { %v1999_v47 = vpop.eup %1998 }
 0x6e9   :  { %v1507_v7 = vadd.f32 1.0, %v1999_v47 }
 0x6ea   :  { %v2001_v58 = vpop.eup %2000 }
 0x6eb   :  { %2004 = vrcp.f32 %v1507_v7  ;;  %v1513_v8 = vadd.f32 1.0, %v2001_v58  ;;  %v2003_v5 = vpop.eup %2002  ;;  %v1837_v58 = vld [vmem:[%s3163_s5] ss:$0 sm:$0xff] }
 0x6ec   :  { %2006 = vtanh.f32 %v1502_v44  ;;  %v1520_v28 = vadd.f32 1.0, %v2003_v5 }
 0x6ed   :  { %2008 = vrcp.f32 %v1513_v8 }
 0x6ee   :  { %2010 = vrcp.f32 %v1520_v28 }
 0x6f8   :  { %v2005_v4 = vpop.eup %2004 }
 0x6f9   :  { %v2007_v57 = vpop.eup %2006 }
 0x6fa   :  { %v2009_v6 = vpop.eup %2008  ;;  %v1524_v37 = vmul.f32 %v2007_v57, %v2005_v4 }
 0x6fb   :  { %v1523_v48 = vmul.f32 %v2009_v6, %v3047_v25  ;;  %v2011_v9 = vpop.eup %2010  ;;  %v1715_v25 = vld [vmem:[#allocation6 + $0x60] sm:$0xff] }
 0x6fd   :  { %v3124_v32 = vadd.f32 %v1524_v37, %v1523_v48 }
 0x6ff   :  { %2012 = vtanh.f32 %v3124_v32 }
 0x70c   :  { %v2013_v10 = vpop.eup %2012 }
 0x70d   :  { %v1527_v11 = vmul.f32 %v2013_v10, %v2011_v9 }
 0x70f   :  { %1598 = vmatmul.mubr.f32.vlgmr.msra.gmra.mxu0 %v1527_v11  ;;  %1669 = vmatmul.mubr.f32.vlgmr.msra.gmra.mxu1 %v1527_v11 }
 0x710   :  { %1856 = vmatpush3.msra.mxu0 %v1718_v51  ;;  %1887 = vmatprep.mubr.msk.f32.mxu0 %vm2168_vm0, %v3468_v34 }
 0x711   :  { %1857 = vmatprep.subr.mxu0 %v3468_v34 }
 0x712   :  { %1858 = vmatpush3.msra.mxu0 %v1717_v12 }
 0x713   :  { %1859 = vmatprep.subr.mxu0 %v3468_v34 }
 0x714   :  { %1860 = vmatpush3.msra.mxu0 %v1716_v13 }
 0x715   :  { %1861 = vmatprep.subr.mxu0 %v3468_v34 }
 0x716   :  { %1862 = vmatpush3.msra.mxu0 %v1715_v25 }
 0x717   :  { %1863 = vmatprep.subr.mxu0 %v3468_v34 }
 0x718   :  { %1864 = vmatpush3.msra.mxu0 %v1714_v14 }
 0x719   :  { %1865 = vmatprep.subr.mxu0 %v3468_v34 }
 0x71a   :  { %1866 = vmatpush3.msra.mxu0 %v1713_v15 }
 0x71b   :  { %1867 = vmatprep.subr.mxu0 %v3468_v34 }
 0x71c   :  { %1868 = vmatpush3.msra.mxu0 %v1712_v16 }
 0x71d   :  { %1869 = vmatprep.subr.mxu0 %v3468_v34 }
 0x71e   :  { %1870 = vmatpush3.msra.mxu0 %v1711_v17 }
 0x71f   :  { %1871 = vmatprep.subr.mxu0 %v3468_v34 }
 0x720   :  { %1872 = vmatpush3.msra.mxu0 %v1710_v18 }
 0x721   :  { %1873 = vmatprep.subr.mxu0 %v3468_v34 }
 0x722   :  { %1874 = vmatpush3.msra.mxu0 %v1709_v19 }
 0x723   :  { %1875 = vmatprep.subr.mxu0 %v3468_v34 }
 0x724   :  { %1876 = vmatpush3.msra.mxu0 %v1708_v20 }
 0x725   :  { %1877 = vmatprep.subr.mxu0 %v3468_v34 }
 0x726   :  { %1878 = vmatpush3.msra.mxu0 %v1707_v21 }
 0x727   :  { %1879 = vmatprep.subr.mxu0 %v3468_v34 }
 0x728   :  { %1880 = vmatpush3.msra.mxu0 %v1706_v22 }
 0x729   :  { %1881 = vmatprep.subr.mxu0 %v3468_v34 }
 0x72a   :  { %1882 = vmatpush3.msra.mxu0 %v1705_v23 }
 0x72b   :  { %1883 = vmatprep.subr.mxu0 %v3468_v34 }
 0x72c   :  { %1884 = vmatpush3.msra.mxu0 %v1704_v24 }
 0x72d   :  { %1885 = vmatprep.subr.mxu0 %v3468_v34  ;;  %v154_v34 = vmul.f32 %v2505_v53, %v100_v29 }
 0x72e   :  { %1886 = vmatpush3.msra.mxu0 %v1703_v26 }
 0x72f   :  { %v207_v38 = vadd.f32 %v3473_v30, %v154_v34 }
 0x7cf   :  { %v1599_v36 = vpop.f32.mrf.mxu0  ;;  %v1670_v55 = vpop.f32.mrf.mxu1 }
 0x7d0   :  { %v1675_v39 = vadd.f32 %v1599_v36, %v204_v35  ;;  %v1677_v62 = vadd.f32 %v1670_v55, %v206_v3 }
 0x7d1   :  { %v1601_v42 = vpop.f32.mrf.mxu0  ;;  %v1672_v63 = vpop.f32.mrf.mxu1 }
 0x7d2   :  { %v1834_v43 = vmul.f32 -1.442695, %v1675_v39  ;;  %v1676_v0 = vadd.f32 %v1601_v42, %v205_v41  ;;  %v1678_v54 = vadd.f32 %v1672_v63, %v207_v38 }
 0x7d4   :  { %2014 = vpow2.f32 %v1834_v43  ;;  %v1835_v56 = vmul.f32 -1.442695, %v1676_v0  ;;  %v1836_v1 = vmul.f32 -1.442695, %v1678_v54 }
 0x7d6   :  { %2016 = vpow2.f32 %v1835_v56 }
 0x7d7   :  { %2018 = vpow2.f32 %v1836_v1 }
 0x7e1   :  { %v2015_v49 = vpop.eup %2014 }
 0x7e2   :  { %v1682_v46 = vadd.f32 1.0, %v2015_v49 }
 0x7e3   :  { %v2017_v59 = vpop.eup %2016 }
 0x7e4   :  { %2020 = vrcp.f32 %v1682_v46  ;;  %v1688_v60 = vadd.f32 1.0, %v2017_v59  ;;  %v2019_v53 = vpop.eup %2018 }
 0x7e5   :  { %2022 = vtanh.f32 %v1677_v62  ;;  %v1695_v30 = vadd.f32 1.0, %v2019_v53 }
 0x7e6   :  { %2024 = vrcp.f32 %v1688_v60 }
 0x7e7   :  { %2026 = vrcp.f32 %v1695_v30 }
 0x7f1   :  { %v2021_v50 = vpop.eup %2020 }
 0x7f2   :  { %v2023_v27 = vpop.eup %2022 }
 0x7f3   :  { %v2025_v61 = vpop.eup %2024  ;;  %v1699_v2 = vmul.f32 %v2023_v27, %v2021_v50 }
 0x7f4   :  { %v1698_v45 = vmul.f32 %v2025_v61, %v3124_v32  ;;  %v2027_v52 = vpop.eup %2026 }
 0x7f6   :  { %v1700_v47 = vadd.f32 %v1699_v2, %v1698_v45 }
 0x7f8   :  { %2028 = vtanh.f32 %v1700_v47 }
 0x805   :  { %v2029_v44 = vpop.eup %2028 }
 0x806   :  { %v1702_v7 = vmul.f32 %v2029_v44, %v2027_v52 }
 0x808   :  { %1888 = vmatmul.mubr.f32.vlgmr.msra.gmra.mxu0 %v1702_v7 }
 0x8c8   :  { %v1792_v8 = vpop.f32.mrf.mxu0 }
 0x8c9   :  { %v1793_v5 = vadd.f32 %v1837_v58, %v1792_v8 }
 0x8ca   :  { %v1889_v4 = vpop.f32.mrf.mxu0 }
 0x8cb   :  { %1796 = vst [vmem:[#allocation8] sm:$0xff] %v1793_v5 }
 0x8cc   :  { %2145 = shalt.err (!%p2142_p0)
}
 0x8cd   :  { %1806 = dma.vmem_to_hbm [thread:$0]  %s1804_s29, 128, %s3164_s6, [#allocation5]  }
 0x8ce   :  { %2158 = dma.done.wait [#allocation5], 128  }
 0x8cf   :  { %2159 = vsyncadd [#allocation5], 4294967168 }
 0x8d0   :  { %1810 = vsyncpa [#allocation4], 1 }
 0x8d1   :  { %1811 = vsyncpa [#allocation7], 1 }
 0x8d2   :  { %1812 = vsyncpa [#allocation5], 1 }

</bundles_post_ra>
